<compile_context>
chip_gen: v5e
topology: v5e:2x2
jax: 0.10.0
libtpu: 0.0.40
codegen_flags: <defaults>
</compile_context>

<pallas_src>
import jax
import jax.numpy as jnp
from jax import lax
from jax.experimental import pallas as pl
from jax.experimental.pallas import tpu as pltpu

# ----- module constants ------------------------------------------------------
CIN, COUT = 3, 64
KSIZE, STRIDE, PAD = 11, 4, 2
LRN_SIZE, LRN_ALPHA, LRN_BETA, LRN_K = 5, 1e-4, 0.75, 2.0
POOL_K, POOL_S = 3, 2

K_RAW = KSIZE * KSIZE * CIN      # 363
K_PAD = 384                      # pad contraction to 3*128 lanes (MXU friendly)
TILE_M = 256                     # output-pixel rows per grid step


# ----- kernel A: im2col-GEMM conv + bias + ReLU + LRN ------------------------
def conv_relu_lrn_kernel(p_ref, w_ref, b_ref, band_ref, o_ref):
    """p: [TM, K_PAD] bf16, w: [K_PAD, 64] bf16 (resident), b: [1, 64] f32,
       band: [64, 64] f32 (|i-j|<=2), o: [TM, 64] f32."""
    # Conv: all 11*11*3 taps folded into a single fat-K MXU matmul (f32 accum).
    acc = jnp.dot(p_ref[...], w_ref[...], preferred_element_type=jnp.float32)
    y = jnp.maximum(acc + b_ref[...], 0.0)                       # bias + ReLU

    # LocalResponseNorm across channels (lane axis): zero-padded window sum of y^2.
    sq = y * y
    win = jnp.dot(sq, band_ref[...], preferred_element_type=jnp.float32)
    t = LRN_K + (LRN_ALPHA / LRN_SIZE) * win
    inv = lax.rsqrt(t) * lax.rsqrt(jnp.sqrt(t))                  # t ** -0.75
    o_ref[...] = (y * inv).astype(o_ref.dtype)


# ----- kernel B: 3x3 / stride-2 max pool (parity-plane formulation) ----------
def maxpool3x3s2_kernel(ee_ref, eo_ref, oe_ref, oo_ref, o_ref):
    """Inputs are the (even/odd row) x (even/odd col) parity planes of one image,
       so every window tap is a unit-stride slice.  o: [Po, Pw, 64]."""
    Po, Pw, _ = o_ref.shape
    m = ee_ref[:Po, :Pw, :]                                  # (2i  , 2j  )
    m = jnp.maximum(m, ee_ref[:Po, 1:Pw + 1, :])             # (2i  , 2j+2)
    m = jnp.maximum(m, ee_ref[1:Po + 1, :Pw, :])             # (2i+2, 2j  )
    m = jnp.maximum(m, ee_ref[1:Po + 1, 1:Pw + 1, :])        # (2i+2, 2j+2)
    m = jnp.maximum(m, eo_ref[:Po, :Pw, :])                  # (2i  , 2j+1)
    m = jnp.maximum(m, eo_ref[1:Po + 1, :Pw, :])             # (2i+2, 2j+1)
    m = jnp.maximum(m, oe_ref[:Po, :Pw, :])                  # (2i+1, 2j  )
    m = jnp.maximum(m, oe_ref[:Po, 1:Pw + 1, :])             # (2i+1, 2j+2)
    m = jnp.maximum(m, oo_ref[:Po, :Pw, :])                  # (2i+1, 2j+1)
    o_ref[...] = m


# ----- wrapper ----------------------------------------------------------------
def c1_forward(x_nchw, weight, bias):
    """x: [N,3,H,W] f32, weight: [64,3,11,11] f32, bias: [64] f32 -> [N,64,Po,Pw]."""
    N, _, H, W = x_nchw.shape
    Ho = (H + 2 * PAD - KSIZE) // STRIDE + 1
    Wo = (W + 2 * PAD - KSIZE) // STRIDE + 1
    Po = (Ho - POOL_K) // POOL_S + 1
    Pw = (Wo - POOL_K) // POOL_S + 1

    # --- glue: NHWC + spatial pad + im2col (tiny Cin=3 input; XLA gather pass) ---
    x_nhwc = jnp.transpose(x_nchw, (0, 2, 3, 1))
    x_pad = jnp.pad(x_nhwc, ((0, 0), (PAD, PAD), (PAD, PAD), (0, 0)))
    slabs = []
    for kh in range(KSIZE):
        for kw in range(KSIZE):
            slabs.append(x_pad[:, kh:kh + STRIDE * (Ho - 1) + 1:STRIDE,
                                  kw:kw + STRIDE * (Wo - 1) + 1:STRIDE, :])
    patches = jnp.concatenate(slabs, axis=-1)            # [N,Ho,Wo,363] (kh,kw,c)
    patches = patches.reshape(N * Ho * Wo, K_RAW)

    M = N * Ho * Wo
    Mp = ((M + TILE_M - 1) // TILE_M) * TILE_M
    patches = jnp.pad(patches, ((0, Mp - M), (0, K_PAD - K_RAW)))
    patches = patches.astype(jnp.bfloat16)                # bf16 feed for the MXU

    w_mat = jnp.transpose(weight, (2, 3, 1, 0)).reshape(K_RAW, COUT)
    w_mat = jnp.pad(w_mat, ((0, K_PAD - K_RAW), (0, 0))).astype(jnp.bfloat16)
    b_row = bias.reshape(1, COUT).astype(jnp.float32)

    ch = jnp.arange(COUT)
    band = (jnp.abs(ch[:, None] - ch[None, :]) <= (LRN_SIZE // 2)).astype(jnp.float32)

    grid_m = Mp // TILE_M
    cost = pl.CostEstimate(
        flops=2 * Mp * K_PAD * COUT + 2 * Mp * COUT * COUT,
        transcendentals=3 * Mp * COUT,
        bytes_accessed=Mp * K_PAD * 2 + K_PAD * COUT * 2 + Mp * COUT * 4)

    y = pl.pallas_call(
        conv_relu_lrn_kernel,
        out_shape=jax.ShapeDtypeStruct((Mp, COUT), jnp.float32),
        grid=(grid_m,),
        in_specs=[
            pl.BlockSpec((TILE_M, K_PAD), lambda i: (i, 0)),   # patch row tile
            pl.BlockSpec((K_PAD, COUT), lambda i: (0, 0)),     # weights (resident)
            pl.BlockSpec((1, COUT), lambda i: (0, 0)),         # bias
            pl.BlockSpec((COUT, COUT), lambda i: (0, 0)),      # LRN band matrix
        ],
        out_specs=pl.BlockSpec((TILE_M, COUT), lambda i: (i, 0)),
        compiler_params=pltpu.CompilerParams(
            dimension_semantics=("parallel",),
            vmem_limit_bytes=32 * 1024 * 1024),
        cost_estimate=cost,
    )(patches, w_mat, b_row, band)

    y = y[:M].reshape(N, Ho, Wo, COUT)

    # Parity planes (even/odd rows x even/odd cols): turns the stride-2 pooling
    # decimation into unit-stride in-kernel slices.
    ee = y[:, 0::2, 0::2, :]
    eo = y[:, 0::2, 1::2, :]
    oe = y[:, 1::2, 0::2, :]
    oo = y[:, 1::2, 1::2, :]
    He, We = ee.shape[1], ee.shape[2]
    Hoo, Woo = oo.shape[1], oo.shape[2]

    out_nhwc = pl.pallas_call(
        maxpool3x3s2_kernel,
        out_shape=jax.ShapeDtypeStruct((N, Po, Pw, COUT), jnp.float32),
        grid=(N,),
        in_specs=[
            pl.BlockSpec((None, He, We, COUT), lambda n: (n, 0, 0, 0)),
            pl.BlockSpec((None, He, Woo, COUT), lambda n: (n, 0, 0, 0)),
            pl.BlockSpec((None, Hoo, We, COUT), lambda n: (n, 0, 0, 0)),
            pl.BlockSpec((None, Hoo, Woo, COUT), lambda n: (n, 0, 0, 0)),
        ],
        out_specs=pl.BlockSpec((None, Po, Pw, COUT), lambda n: (n, 0, 0, 0)),
        compiler_params=pltpu.CompilerParams(
            dimension_semantics=("parallel",),
            vmem_limit_bytes=32 * 1024 * 1024),
    )(ee, eo, oe, oo)

    return jnp.transpose(out_nhwc, (0, 3, 1, 2))          # back to NCHW


# ----- pure-JAX reference -----------------------------------------------------
def _reference(x, weight, bias):
    y = lax.conv_general_dilated(
        x, weight, window_strides=(STRIDE, STRIDE),
        padding=((PAD, PAD), (PAD, PAD)),
        dimension_numbers=("NCHW", "OIHW", "NCHW"))
    y = jnp.maximum(y + bias.reshape(1, -1, 1, 1), 0.0)
    C = y.shape[1]
    sq = y * y
    sqp = jnp.pad(sq, ((0, 0), (LRN_SIZE // 2, LRN_SIZE // 2), (0, 0), (0, 0)))
    win = sum(sqp[:, i:i + C, :, :] for i in range(LRN_SIZE))
    y = y / (LRN_K + (LRN_ALPHA / LRN_SIZE) * win) ** LRN_BETA
    return lax.reduce_window(y, -jnp.inf, lax.max,
                             (1, 1, POOL_K, POOL_K), (1, 1, POOL_S, POOL_S),
                             "VALID")


if __name__ == "__main__":
    key = jax.random.PRNGKey(0)
    kx, kw, kb = jax.random.split(key, 3)

    N, H, W = 2, 63, 63                      # conv out 15x15, pool out 7x7
    x = jax.random.normal(kx, (N, CIN, H, W), dtype=jnp.float32)
    weight = jax.random.normal(kw, (COUT, CIN, KSIZE, KSIZE), jnp.float32) * 0.02
    bias = jax.random.normal(kb, (COUT,), jnp.float32) * 0.02

    out = jax.block_until_ready(c1_forward(x, weight, bias))
    ref = jax.block_until_ready(_reference(x, weight, bias))

    assert out.shape == ref.shape, (out.shape, ref.shape)
    max_err = float(jnp.max(jnp.abs(out - ref)))
    # bf16 MXU inputs with f32 accumulation -> slightly looser tolerance.
    assert jnp.allclose(out, ref, rtol=2e-2, atol=2e-2), max_err

    print("KERNEL_OK")
</pallas_src>

<mosaic_0001>
module attributes {stable_mosaic.version = 11 : i64} {
  func.func @conv_relu_lrn_kernel(%arg0: i32, %arg1: memref<256x384xbf16, #tpu.memory_space<vmem>>, %arg2: memref<384x64xbf16, #tpu.memory_space<vmem>>, %arg3: memref<1x64xf32, #tpu.memory_space<vmem>>, %arg4: memref<64x64xf32, #tpu.memory_space<vmem>>, %arg5: memref<256x64xf32, #tpu.memory_space<vmem>>) attributes {dimension_semantics = [#tpu.dimension_semantics<parallel>], iteration_bounds = array<i64: 2>, scalar_prefetch = 0 : i64, scratch_operands = 0 : i64, tpu.core_type = #tpu.core_type<tc>, window_params = [{transform_indices = @transform_0, window_bounds = array<i64: 256, 384>}, {pipeline_mode = #tpu.pipeline_mode<synchronous>, transform_indices = @transform_1, window_bounds = array<i64: 384, 64>}, {pipeline_mode = #tpu.pipeline_mode<synchronous>, transform_indices = @transform_2, window_bounds = array<i64: 1, 64>}, {pipeline_mode = #tpu.pipeline_mode<synchronous>, transform_indices = @transform_3, window_bounds = array<i64: 64, 64>}, {transform_indices = @transform_4, window_bounds = array<i64: 256, 64>}]} {
    %c0 = arith.constant 0 : index
    %c0_0 = arith.constant 0 : index
    %0 = vector.load %arg1[%c0, %c0_0] : memref<256x384xbf16, #tpu.memory_space<vmem>>, vector<256x384xbf16>
    %c0_1 = arith.constant 0 : index
    %c0_2 = arith.constant 0 : index
    %1 = vector.load %arg2[%c0_1, %c0_2] : memref<384x64xbf16, #tpu.memory_space<vmem>>, vector<384x64xbf16>
    %cst = arith.constant dense<0.000000e+00> : vector<256x64xf32>
    %2 = tpu.matmul %0, %1, %cst {dimension_numbers = #tpu.dot_dimension_numbers<[1], [0], [0], [1], [0, 0, 1, 1], [], []>} : vector<256x384xbf16>, vector<384x64xbf16>, vector<256x64xf32> -> vector<256x64xf32>
    %c0_3 = arith.constant 0 : index
    %c0_4 = arith.constant 0 : index
    %3 = vector.load %arg3[%c0_3, %c0_4] : memref<1x64xf32, #tpu.memory_space<vmem>>, vector<1x64xf32>
    %4 = vector.broadcast %3 : vector<1x64xf32> to vector<256x64xf32>
    %5 = arith.addf %2, %4 : vector<256x64xf32>
    %cst_5 = arith.constant 0.000000e+00 : f32
    %6 = vector.broadcast %cst_5 : f32 to vector<256x64xf32>
    %7 = arith.maximumf %5, %6 : vector<256x64xf32>
    %8 = arith.mulf %7, %7 : vector<256x64xf32>
    %c0_6 = arith.constant 0 : index
    %c0_7 = arith.constant 0 : index
    %9 = vector.load %arg4[%c0_6, %c0_7] : memref<64x64xf32, #tpu.memory_space<vmem>>, vector<64x64xf32>
    %cst_8 = arith.constant dense<0.000000e+00> : vector<256x64xf32>
    %10 = tpu.matmul %8, %9, %cst_8 {dimension_numbers = #tpu.dot_dimension_numbers<[1], [0], [0], [1], [0, 0, 1, 1], [], []>} : vector<256x64xf32>, vector<64x64xf32>, vector<256x64xf32> -> vector<256x64xf32>
    %cst_9 = arith.constant 2.000000e-05 : f32
    %11 = vector.broadcast %cst_9 : f32 to vector<256x64xf32>
    %12 = arith.mulf %11, %10 : vector<256x64xf32>
    %cst_10 = arith.constant 2.000000e+00 : f32
    %13 = vector.broadcast %cst_10 : f32 to vector<256x64xf32>
    %14 = arith.addf %13, %12 : vector<256x64xf32>
    %15 = math.rsqrt %14 : vector<256x64xf32>
    %16 = math.sqrt %14 : vector<256x64xf32>
    %17 = math.rsqrt %16 : vector<256x64xf32>
    %18 = arith.mulf %15, %17 : vector<256x64xf32>
    %19 = arith.mulf %7, %18 : vector<256x64xf32>
    %c0_11 = arith.constant 0 : index
    %c0_12 = arith.constant 0 : index
    %20 = vector.load %arg5[%c0_11, %c0_12] : memref<256x64xf32, #tpu.memory_space<vmem>>, vector<256x64xf32>
    tpu.vector_store %arg5[%c0_11, %c0_12], %19 {strides = array<i32>} : memref<256x64xf32, #tpu.memory_space<vmem>>, vector<256x64xf32>,
    return
  }
  func.func @transform_0(%arg0: i32) -> (i32, i32) {
    %c0_i32 = arith.constant 0 : i32
    %c0_i32_0 = arith.constant 0 : i32
    return %arg0, %c0_i32 : i32, i32
  }
  func.func @transform_1(%arg0: i32) -> (i32, i32) {
    %c0_i32 = arith.constant 0 : i32
    %c0_i32_0 = arith.constant 0 : i32
    %c0_i32_1 = arith.constant 0 : i32
    return %c0_i32, %c0_i32_0 : i32, i32
  }
  func.func @transform_2(%arg0: i32) -> (i32, i32) {
    %c0_i32 = arith.constant 0 : i32
    %c0_i32_0 = arith.constant 0 : i32
    %c0_i32_1 = arith.constant 0 : i32
    return %c0_i32, %c0_i32_0 : i32, i32
  }
  func.func @transform_3(%arg0: i32) -> (i32, i32) {
    %c0_i32 = arith.constant 0 : i32
    %c0_i32_0 = arith.constant 0 : i32
    %c0_i32_1 = arith.constant 0 : i32
    return %c0_i32, %c0_i32_0 : i32, i32
  }
  func.func @transform_4(%arg0: i32) -> (i32, i32) {
    %c0_i32 = arith.constant 0 : i32
    %c0_i32_0 = arith.constant 0 : i32
    return %arg0, %c0_i32 : i32, i32
  }
}

</mosaic_0001>

<bundles_post_ra>
// kernel: tpu_custom_call.1
= control target key start
LH: loop header
LB: loop body
LE: loop exit
PB: predicated region body
PF: predicated region fallthrough
CT: control target
= control target key end

     0   :  { %9 = vsyncpa [#allocation3], 0  ;;  %s4801_s0 = inlined_call_operand.hbm [shape: bf16[512,384], index: 0, kind: input, shape index: {}]   ;;  %s4802_s1 = inlined_call_operand.vmem [shape: bf16[384,64], index: 1, kind: input, shape index: {}]   ;;  %s4803_s2 = inlined_call_operand.vmem [shape: f32[1,64], index: 2, kind: input, shape index: {}]   ;;  %s4804_s3 = inlined_call_operand.vmem [shape: f32[64,64], index: 3, kind: input, shape index: {}]   ;;  %s4805_s4 = inlined_call_operand.vmem [shape: f32[512,64], index: 4, kind: output, shape index: {}]  }
   0x1   :  { %11 = vsyncpa [#allocation3 + $0x1], 0  ;;  %s3210_s15 = smov 0   ;;  %s3212_s16 = smov 0  }
   0x2   :  { %s3214_s17 = smov 0   ;;  %s3216_s18 = smov 0  }
   0x3 LB: > { %s2539_s19 = sadd.s32 4294967295, %s3181_s18   ;;  %s3230_s20 = sadd.s32 1, %s3181_s18   ;;  %s3181_s18 = sphi %s3216_s18, %s4831_s18   ;;  %s3177_s17 = sphi %s3214_s17, %s4830_s17   ;;  %s3173_s16 = sphi %s3212_s16, %s4829_s16   ;;  %s3169_s15 = sphi %s3210_s15, %s4828_s15  }
   0x4   : > { %s21_s21 = ssub.s32 %s3181_s18, %s3230_s20  ;;  %s24_s22 = sadd.s32 1, %s3177_s17 }
   0x5   : > { %p22_p0 = scmp.eq.s32.totalorder %s21_s21, 0  ;;  %p31_p1 = scmp.ne.s32.totalorder %s3177_s17, %s3173_s16 }
   0x6   : > { %p32_p2 = scmp.eq.s32.totalorder %s3181_s18, 0  ;;  %p37_p3 = scmp.ne.s32.totalorder %s3173_s16, %s3169_s15 }
   0x7   : > { %s3240_s23 = scalar_select %p22_p0, %s3177_s17, %s24_s22  }
   0x8   : > { %p33_p4 = por %p32_p2, %p31_p1  ;;  %p38_p5 = scmp.eq.s32.totalorder %s2539_s19, 0 }
   0x9   : > { %p2952_p6 = scmp.lt.s32.totalorder %s3181_s18, 2  ;;  %s159_s25 = sand.u32 1, %s3177_s17  }
   0xa   : > { %p3245_p7 = por %p38_p5, %p37_p3  ;;  %s2943_s26 = smul.u32 384, %s159_s25 }
   0xb   : > { %s2944_s27 = smul.u32 384, %s3181_s18  ;;  %p3251_p8 = pnand %p2952_p6, %p33_p4 }
   0xc   : > { %s163_s6 = scalar_lea.vmem [#allocation2], %s2943_s26  ;;  %p2546_p9 = scmp.ge.s32.totalorder %s3181_s18, 1 }
   0xd   : > { %s169_s5 = scalar_lea.hbm %s4801_s0, %s2944_s27  ;;  %s172_s7 = sshll.u32 %s163_s6, 4  ;;  %s173_s7 = int_to_ptr.vmem [resolvable:$true] %s172_s7 }
   0xe   : > { %s170_s8 = sshll.u32 %s169_s5, 4  ;;  %s160_s9 = scalar_lea.sflag [#allocation3], %s159_s25  ;;  %s171_s8 = int_to_ptr.hbm [resolvable:$true] %s170_s8 }
   0xf   : > { %s3117_s10 = sshra.s32 %s171_s8, 4  ;;  %p3121_p11 = pneg %p3251_p8  ;;  %s3118_s10 = int_to_ptr.hbm [resolvable:$true] %s3117_s10 }
  0x10   : > { %s3119_s11 = scalar_lea.hbm %s3118_s10, 384  ;;  %s3124_s14 = scalar_lea.hbm %s4801_s0, 768 }
  0x11   : > { %p3120_p10 = scmp.ne.s32.totalorder %s3118_s10, %s3119_s11  ;;  %p3125_p0 = scmp.lt.s32.totalorder %s3118_s10, %s4801_s0 }
  0x12   : > { %p3126_p1 = scmp.lt.s32.totalorder %s3124_s14, %s3119_s11 }
  0x13   : > { %p3122_p12 = pnand %p3121_p11, %p3120_p10 }
  0x14   : > { %p3127_p2 = por %p3126_p1, %p3125_p0 }
  0x15   : > { %p3123_p13 = pneg %p3122_p12 }
  0x17   : > { %p3128_p3 = pnand %p3127_p2, %p3123_p13 }
  0x19   : > { %3131 = shalt.err (!%p3128_p3)
}
  0x1a   : > { %s3183_s22 = smov 192   ;;  %s3184_s25 = smov 12  }
  0x1b   : > { %2951 = dma.hbm_to_vmem [thread:$0]  (!%p3251_p8), %s171_s8, 6144, %s173_s7, %s160_s9, %s3183_s22, %s3183_s22, %s3184_s25  }
  0x1c   : > { %p180_p4 = scmp.lt.s32.totalorder %s3181_s18, 3 }
  0x1e   : > { %p181_p5 = pnand %p2546_p9, %p180_p4 }
  0x1f   : > { %s186_s26 = sand.u32 (!%p181_p5), 1, %s3173_s16  }
  0x20   : > { %184 = sbr.rel (%p181_p5) target bundleno = 642 (0x282), region = 36  ;;  %s187_s29 = scalar_lea.sflag (!%p181_p5), [#allocation3], %s186_s26 }
  0x21   : > { %s2945_s27 = smul.u32 (!%p181_p5), 384, %s186_s26 }
  0x23   : > { %s3273_s30 = scalar_lea.vmem (!%p181_p5), [#allocation2], %s2945_s27 }
  0x25   : > { %3164 = dma.done.wait (%p3245_p7), %s187_s29, 6144  }
  0x26   : > { %3166 = vsyncadd (%p3245_p7), %s187_s29, 4294961152  ;;  %v2926_v0 = vld [vmem:[%s4802_s1 + $0x38] sm:$0xff]  ;;  %v2925_v3 = vld [vmem:[%s4802_s1 + $0x30] sm:$0xff]  ;;  %vm1078_vm0 = vcmask 523264  }
  0x27   : > { %v2934_v1 = vld [vmem:[%s4802_s1 + $0x78] sm:$0xff]  ;;  %739 = vmatpush.bf16.msra.mxu0 %v2926_v0  ;;  %v2933_v4 = vld [vmem:[%s4802_s1 + $0x70] sm:$0xff]  ;;  %v2924_v6 = vld [vmem:[%s4802_s1 + $0x28] sm:$0xff] }
  0x28   : > { %v2942_v2 = vld [vmem:[%s4802_s1 + $0xb8] sm:$0xff]  ;;  %828 = vmatpush.bf16.msra.mxu1 %v2934_v1  ;;  %v2941_v5 = vld [vmem:[%s4802_s1 + $0xb0] sm:$0xff]  ;;  %v2932_v7 = vld [vmem:[%s4802_s1 + $0x68] sm:$0xff] }
  0x29   : > { %917 = vmatpush.bf16.msra.mxu2 %v2942_v2  ;;  %v2940_v8 = vld [vmem:[%s4802_s1 + $0xa8] sm:$0xff]  ;;  %v2923_v9 = vld [vmem:[%s4802_s1 + $0x20] sm:$0xff]  ;;  %v2922_v12 = vld [vmem:[%s4802_s1 + $0x18] sm:$0xff] }
  0x2a   : > { %v2931_v10 = vld [vmem:[%s4802_s1 + $0x60] sm:$0xff]  ;;  %v2930_v13 = vld [vmem:[%s4802_s1 + $0x58] sm:$0xff]  ;;  %v2921_v15 = vld [vmem:[%s4802_s1 + $0x10] sm:$0xff] }
  0x2b   : > { %740 = vmatpush.bf16.msra.mxu0 %v2925_v3  ;;  %v2939_v11 = vld [vmem:[%s4802_s1 + $0xa0] sm:$0xff]  ;;  %v2938_v14 = vld [vmem:[%s4802_s1 + $0x98] sm:$0xff]  ;;  %v2929_v16 = vld [vmem:[%s4802_s1 + $0x50] sm:$0xff] }
  0x2c   : > { %829 = vmatpush.bf16.msra.mxu1 %v2933_v4  ;;  %v2937_v17 = vld [vmem:[%s4802_s1 + $0x90] sm:$0xff]  ;;  %v2920_v18 = vld [vmem:[%s4802_s1 + $0x8] sm:$0xff]  ;;  %v2919_v21 = vld [vmem:[%s4802_s1] sm:$0xff] }
  0x2d   : > { %918 = vmatpush.bf16.msra.mxu2 %v2941_v5  ;;  %v2928_v19 = vld [vmem:[%s4802_s1 + $0x48] sm:$0xff]  ;;  %v2927_v22 = vld [vmem:[%s4802_s1 + $0x40] sm:$0xff]  ;;  %v2553_v26 = vld [vmem:[%s3273_s30 + $0xc] sm:$0xf0] }
  0x2e   : > { %v2936_v20 = vld [vmem:[%s4802_s1 + $0x88] sm:$0xff]  ;;  %v2551_v23 = vld [vmem:[%s3273_s30] sm:$0xf]  ;;  %v2871_v25 = vld [vmem:[%s3273_s30 + $0x4] sm:$0xf] }
  0x2f   : > { %741 = vmatpush.bf16.msra.mxu0 %v2924_v6  ;;  %v2872_v24 = vld [vmem:[%s3273_s30 + $0x8] sm:$0xf0]  ;;  %v2935_v27 = vld [vmem:[%s4802_s1 + $0x80] sm:$0xff]  ;;  %v2559_v28 = vld [vmem:[%s3273_s30 + $0x8] sm:$0xf]  ;;  %v2556_v31 = vor.u32 %v2871_v25, %v2553_v26 }
  0x30   : > { %830 = vmatpush.bf16.msra.mxu1 %v2932_v7  ;;  %v2873_v29 = vld [vmem:[%s3273_s30 + $0x10] sm:$0xf0]  ;;  %v2552_v30 = vor.u32 %v2872_v24, %v2551_v23  ;;  %v2563_v33 = vld [vmem:[%s3273_s30 + $0x18] sm:$0xf]  ;;  %v2875_v34 = vld [vmem:[%s3273_s30 + $0x20] sm:$0xf0] }
  0x31   : > { %919 = vmatpush.bf16.msra.mxu2 %v2940_v8  ;;  %v2560_v32 = vor.u32 %v2873_v29, %v2559_v28  ;;  %v2874_v35 = vld [vmem:[%s3273_s30 + $0x1c] sm:$0xf]  ;;  %v2565_v36 = vld [vmem:[%s3273_s30 + $0x24] sm:$0xf0]  ;;  %v2571_v37 = vld [vmem:[%s3273_s30 + $0x20] sm:$0xf]  ;;  %v2564_v39 = vor.u32 %v2875_v34, %v2563_v33 }
  0x32   : > { %v2876_v38 = vld [vmem:[%s3273_s30 + $0x28] sm:$0xf0]  ;;  %v2568_v40 = vor.u32 %v2874_v35, %v2565_v36  ;;  %v2575_v42 = vld [vmem:[%s3273_s30 + $0x30] sm:$0xf]  ;;  %v2878_v43 = vld [vmem:[%s3273_s30 + $0x38] sm:$0xf0] }
  0x33   : > { %742 = vmatpush.bf16.msra.mxu0 %v2923_v9  ;;  %v2572_v41 = vor.u32 %v2876_v38, %v2571_v37  ;;  %v2877_v44 = vld [vmem:[%s3273_s30 + $0x34] sm:$0xf]  ;;  %v2577_v45 = vld [vmem:[%s3273_s30 + $0x3c] sm:$0xf0]  ;;  %v2583_v46 = vld [vmem:[%s3273_s30 + $0x38] sm:$0xf]  ;;  %v2576_v48 = vor.u32 %v2878_v43, %v2575_v42 }
  0x34   : > { %831 = vmatpush.bf16.msra.mxu1 %v2931_v10  ;;  %v2879_v47 = vld [vmem:[%s3273_s30 + $0x40] sm:$0xf0]  ;;  %v2580_v49 = vor.u32 %v2877_v44, %v2577_v45  ;;  %v2587_v51 = vld [vmem:[%s3273_s30 + $0x48] sm:$0xf]  ;;  %v2881_v52 = vld [vmem:[%s3273_s30 + $0x50] sm:$0xf0] }
  0x35   : > { %920 = vmatpush.bf16.msra.mxu2 %v2939_v11  ;;  %v2584_v50 = vor.u32 %v2879_v47, %v2583_v46  ;;  %v2880_v53 = vld [vmem:[%s3273_s30 + $0x4c] sm:$0xf]  ;;  %v2589_v54 = vld [vmem:[%s3273_s30 + $0x54] sm:$0xf0]  ;;  %v2595_v55 = vld [vmem:[%s3273_s30 + $0x50] sm:$0xf]  ;;  %v2588_v57 = vor.u32 %v2881_v52, %v2587_v51 }
  0x36   : > { %v2882_v56 = vld [vmem:[%s3273_s30 + $0x58] sm:$0xf0]  ;;  %v2592_v58 = vor.u32 %v2880_v53, %v2589_v54  ;;  %v2599_v60 = vld [vmem:[%s3273_s30 + $0x60] sm:$0xf]  ;;  %v2884_v61 = vld [vmem:[%s3273_s30 + $0x68] sm:$0xf0] }
  0x37   : > { %743 = vmatpush.bf16.msra.mxu0 %v2922_v12  ;;  %v2596_v59 = vor.u32 %v2882_v56, %v2595_v55  ;;  %v2883_v62 = vld [vmem:[%s3273_s30 + $0x64] sm:$0xf]  ;;  %v2601_v63 = vld [vmem:[%s3273_s30 + $0x6c] sm:$0xf0]  ;;  %v2607_v0 = vld [vmem:[%s3273_s30 + $0x68] sm:$0xf]  ;;  %v2600_v2 = vor.u32 %v2884_v61, %v2599_v60 }
  0x38   : > { %832 = vmatpush.bf16.msra.mxu1 %v2930_v13  ;;  %v2885_v1 = vld [vmem:[%s3273_s30 + $0x70] sm:$0xf0]  ;;  %v2604_v3 = vor.u32 %v2883_v62, %v2601_v63  ;;  %v2611_v5 = vld [vmem:[%s3273_s30 + $0x78] sm:$0xf]  ;;  %v2887_v6 = vld [vmem:[%s3273_s30 + $0x80] sm:$0xf0] }
  0x39   : > { %921 = vmatpush.bf16.msra.mxu2 %v2938_v14  ;;  %v2608_v4 = vor.u32 %v2885_v1, %v2607_v0  ;;  %v2886_v7 = vld [vmem:[%s3273_s30 + $0x7c] sm:$0xf]  ;;  %v2613_v8 = vld [vmem:[%s3273_s30 + $0x84] sm:$0xf0]  ;;  %v2619_v9 = vld [vmem:[%s3273_s30 + $0x80] sm:$0xf]  ;;  %v2612_v11 = vor.u32 %v2887_v6, %v2611_v5 }
  0x3a   : > { %v2888_v10 = vld [vmem:[%s3273_s30 + $0x88] sm:$0xf0]  ;;  %v2616_v12 = vor.u32 %v2886_v7, %v2613_v8  ;;  %v1077_v14 = vld [vmem:[%s4804_s3 + $0x38] sm:$0xff]  ;;  %v1076_v24 = vld [vmem:[%s4804_s3 + $0x30] sm:$0xff] }
  0x3b   : > { %744 = vmatpush.bf16.msra.mxu0 %v2921_v15  ;;  %v2620_v13 = vor.u32 %v2888_v10, %v2619_v9  ;;  %1183 = vmatpush.msra.mxu3 %v1077_v14  ;;  %v2623_v15 = vld [vmem:[%s3273_s30 + $0x90] sm:$0xf]  ;;  %v1075_v25 = vld [vmem:[%s4804_s3 + $0x28] sm:$0xff]  ;;  %v1074_v26 = vld [vmem:[%s4804_s3 + $0x20] sm:$0xff] }
  0x3c   : > { %833 = vmatpush.bf16.msra.mxu1 %v2929_v16  ;;  %v2890_v16 = vld [vmem:[%s3273_s30 + $0x98] sm:$0xf0]  ;;  %v1072_v28 = vld [vmem:[%s4804_s3 + $0x10] sm:$0xff]  ;;  %v1071_v29 = vld [vmem:[%s4804_s3 + $0x8] sm:$0xff] }
  0x3d   : > { %922 = vmatpush.bf16.msra.mxu2 %v2937_v17  ;;  %v2889_v17 = vld [vmem:[%s3273_s30 + $0x94] sm:$0xf]  ;;  %1184 = vmatpush.msra.mxu3 %v1076_v24  ;;  %v2637_v33 = vld [vmem:[%s3273_s30 + $0xb4] sm:$0xf0]  ;;  %v1070_v34 = vld [vmem:[%s4804_s3] sm:$0xff] }
  0x3e   : > { %v2643_v35 = vld [vmem:[%s3273_s30 + $0xb0] sm:$0xf]  ;;  %v2894_v36 = vld [vmem:[%s3273_s30 + $0xb8] sm:$0xf0]  ;;  %v2895_v42 = vld [vmem:[%s3273_s30 + $0xc4] sm:$0xf] }
  0x3f   : > { %745 = vmatpush.bf16.msra.mxu0 %v2920_v18  ;;  %v2625_v18 = vld [vmem:[%s3273_s30 + $0x9c] sm:$0xf0]  ;;  %1185 = vmatpush.msra.mxu3 %v1075_v25  ;;  %v2649_v43 = vld [vmem:[%s3273_s30 + $0xcc] sm:$0xf0]  ;;  %v2655_v45 = vld [vmem:[%s3273_s30 + $0xc8] sm:$0xf] }
  0x40   : > { %834 = vmatpush.bf16.msra.mxu1 %v2928_v19  ;;  %v2631_v19 = vld [vmem:[%s3273_s30 + $0x98] sm:$0xf]  ;;  %v3430_v44 = vld [vmem:[%s4803_s2] ss:$0 sm:$0xff]  ;;  %v2897_v46 = vld [vmem:[%s3273_s30 + $0xd0] sm:$0xf0] }
  0x41   : > { %923 = vmatpush.bf16.msra.mxu2 %v2936_v20  ;;  %v2891_v20 = vld [vmem:[%s3273_s30 + $0xa0] sm:$0xf0]  ;;  %1186 = vmatpush.msra.mxu3 %v1074_v26  ;;  %v2656_v51 = vor.u32 %v2897_v46, %v2655_v45  ;;  %v2659_v60 = vld [vmem:[%s3273_s30 + $0xd8] sm:$0xf]  ;;  %v2898_v63 = vld [vmem:[%s3273_s30 + $0xdc] sm:$0xf] }
  0x42   : > { %v2632_v23 = vor.u32 %v2891_v20, %v2631_v19  ;;  %v2899_v62 = vld [vmem:[%s3273_s30 + $0xe0] sm:$0xf0]  ;;  %v2661_v0 = vld [vmem:[%s3273_s30 + $0xe4] sm:$0xf0]  ;;  %v2667_v1 = vld [vmem:[%s3273_s30 + $0xe0] sm:$0xf] }
  0x43   : > { %746 = vmatpush.bf16.msra.mxu0 %v2919_v21  ;;  %v2624_v21 = vor.u32 %v2890_v16, %v2623_v15  ;;  %v2660_v5 = vor.u32 %v2899_v62, %v2659_v60  ;;  %v2664_v6 = vor.u32 %v2898_v63, %v2661_v0  ;;  %v2901_v24 = vld [vmem:[%s3273_s30 + $0xf4] sm:$0xf]  ;;  %v2673_v25 = vld [vmem:[%s3273_s30 + $0xfc] sm:$0xf0]  ;;  %v2679_v26 = vld [vmem:[%s3273_s30 + $0xf8] sm:$0xf] }
  0x44   : > { %835 = vmatpush.bf16.msra.mxu1 %v2927_v22  ;;  %v2628_v22 = vor.u32 %v2889_v17, %v2625_v18 }
  0x45   : > { %924 = vmatpush.bf16.msra.mxu2 %v2935_v27  ;;  %v1073_v27 = vld [vmem:[%s4804_s3 + $0x18] sm:$0xff] }
  0x46   : > { %747 = vmatmul.bf16.vlgmr.msra.gmra.mxu0 %v2552_v30  ;;  %1187 = vmatpush.msra.mxu3 %v1073_v27  ;;  %v2635_v30 = vld [vmem:[%s3273_s30 + $0xa8] sm:$0xf]  ;;  %v2903_v27 = vld [vmem:[%s3273_s30 + $0x100] sm:$0xf0] }
  0x47   : > { %836 = vmatmul.bf16.vlgmr.msra.gmra.mxu1 %v2556_v31  ;;  %v2893_v31 = vld [vmem:[%s3273_s30 + $0xb0] sm:$0xf0] }
  0x48   : > { %925 = vmatmul.bf16.vlgmr.msra.gmra.mxu2 %v2560_v32  ;;  %1188 = vmatpush.msra.mxu3 %v1072_v28  ;;  %v2892_v32 = vld [vmem:[%s3273_s30 + $0xac] sm:$0xf]  ;;  %v2636_v37 = vor.u32 %v2893_v31, %v2635_v30  ;;  %v2676_v31 = vor.u32 %v2901_v24, %v2673_v25 }
  0x49   : > { %v2640_v38 = vor.u32 %v2892_v32, %v2637_v33 }
  0x4a   : > { %1189 = vmatpush.msra.mxu3 %v1071_v29 }
  0x4c   : > { %1190 = vmatpush.msra.mxu3 %v1070_v34 }
  0x56   : > { %752 = vmatmul.bf16.gmra.mxu0 %v2564_v39  ;;  %v2644_v39 = vor.u32 %v2894_v36, %v2643_v35  ;;  %v2680_v35 = vor.u32 %v2903_v27, %v2679_v26 }
  0x57   : > { %841 = vmatmul.bf16.gmra.mxu1 %v2568_v40  ;;  %v2647_v40 = vld [vmem:[%s3273_s30 + $0xc0] sm:$0xf] }
  0x58   : > { %930 = vmatmul.bf16.gmra.mxu2 %v2572_v41  ;;  %v2896_v41 = vld [vmem:[%s3273_s30 + $0xc8] sm:$0xf0] }
  0x59   : > { %v2648_v47 = vor.u32 %v2896_v41, %v2647_v40 }
  0x66   : > { %757 = vmatmul.bf16.gmra.mxu0 %v2576_v48  ;;  %v2652_v48 = vor.u32 %v2895_v42, %v2649_v43 }
  0x67   : > { %846 = vmatmul.bf16.gmra.mxu1 %v2580_v49 }
  0x68   : > { %935 = vmatmul.bf16.gmra.mxu2 %v2584_v50 }
  0x76   : > { %762 = vmatmul.bf16.gmra.mxu0 %v2588_v57 }
  0x77   : > { %851 = vmatmul.bf16.gmra.mxu1 %v2592_v58 }
  0x78   : > { %940 = vmatmul.bf16.gmra.mxu2 %v2596_v59 }
  0x86   : > { %767 = vmatmul.bf16.gmra.mxu0 %v2600_v2  ;;  %v2900_v2 = vld [vmem:[%s3273_s30 + $0xe8] sm:$0xf0] }
  0x87   : > { %856 = vmatmul.bf16.gmra.mxu1 %v2604_v3  ;;  %v2668_v10 = vor.u32 %v2900_v2, %v2667_v1 }
  0x88   : > { %945 = vmatmul.bf16.gmra.mxu2 %v2608_v4 }
  0x96   : > { %772 = vmatmul.bf16.gmra.mxu0 %v2612_v11 }
  0x97   : > { %861 = vmatmul.bf16.gmra.mxu1 %v2616_v12 }
  0x98   : > { %950 = vmatmul.bf16.gmra.mxu2 %v2620_v13 }
  0xa6   : > { %777 = vmatmul.bf16.gmra.mxu0 %v2624_v21  ;;  %v2671_v21 = vld [vmem:[%s3273_s30 + $0xf0] sm:$0xf] }
  0xa7   : > { %866 = vmatmul.bf16.gmra.mxu1 %v2628_v22 }
  0xa8   : > { %955 = vmatmul.bf16.gmra.mxu2 %v2632_v23  ;;  %v2902_v23 = vld [vmem:[%s3273_s30 + $0xf8] sm:$0xf0] }
  0xa9   : > { %v2672_v30 = vor.u32 %v2902_v23, %v2671_v21 }
  0xb6   : > { %782 = vmatmul.bf16.gmra.mxu0 %v2636_v37 }
  0xb7   : > { %871 = vmatmul.bf16.gmra.mxu1 %v2640_v38 }
  0xb8   : > { %960 = vmatmul.bf16.gmra.mxu2 %v2644_v39 }
  0xc3   : > { %v748_v49 = vpop.f32.mrf.mxu0 }
  0xc4   : > { %v837_v50 = vpop.f32.mrf.mxu1  ;;  %v749_v52 = vadd.f32 %v3430_v44, %v748_v49  ;;  %v2905_v49 = vld [vmem:[%s3273_s30 + $0x110] sm:$0xf0] }
  0xc6   : > { %787 = vmatmul.bf16.gmra.mxu0 %v2648_v47  ;;  %v838_v53 = vadd.f32 %v837_v50, %v749_v52  ;;  %v2683_v47 = vld [vmem:[%s3273_s30 + $0x108] sm:$0xf]  ;;  %v2904_v50 = vld [vmem:[%s3273_s30 + $0x10c] sm:$0xf]  ;;  %v2691_v52 = vld [vmem:[%s3273_s30 + $0x110] sm:$0xf] }
  0xc7   : > { %876 = vmatmul.bf16.gmra.mxu1 %v2652_v48 }
  0xc8   : > { %965 = vmatmul.bf16.gmra.mxu2 %v2656_v51  ;;  %v2685_v51 = vld [vmem:[%s3273_s30 + $0x114] sm:$0xf0] }
  0xcb   : > { %v926_v54 = vpop.f32.mrf.mxu2  ;;  %v750_v56 = vpop.f32.mrf.mxu0 }
  0xcc   : > { %v927_v55 = vadd.f32 %v926_v54, %v838_v53  ;;  %v839_v57 = vpop.f32.mrf.mxu1  ;;  %v751_v59 = vadd.f32 %v3430_v44, %v750_v56  ;;  %v2906_v53 = vld [vmem:[%s3273_s30 + $0x118] sm:$0xf0]  ;;  %v2684_v56 = vor.u32 %v2905_v49, %v2683_v47 }
  0xcd   : > { %v2692_v62 = vor.u32 %v2906_v53, %v2691_v52 }
  0xce   : > { %v3435_v58 = vmax.f32 %v927_v55, 0.0  ;;  %v840_v3 = vadd.f32 %v839_v57, %v751_v59  ;;  %v2688_v57 = vor.u32 %v2904_v50, %v2685_v51 }
  0xd0   : > { %v1038_v61 = vmul.f32 %v3435_v58, %v3435_v58 }
  0xd2   : > { %2837 = vmatmul.msk.f32.vlgmr.msra.gmra.mxu3 %vm1078_vm0, %v1038_v61 }
  0xd3   : > { %v928_v4 = vpop.f32.mrf.mxu2  ;;  %v753_v8 = vpop.f32.mrf.mxu0 }
  0xd4   : > { %v929_v7 = vadd.f32 %v928_v4, %v840_v3  ;;  %v842_v9 = vpop.f32.mrf.mxu1  ;;  %v754_v11 = vadd.f32 %v3430_v44, %v753_v8 }
  0xd6   : > { %v3448_v12 = vmax.f32 %v929_v7, 0.0  ;;  %792 = vmatmul.bf16.gmra.mxu0 %v2660_v5  ;;  %v843_v13 = vadd.f32 %v842_v9, %v754_v11  ;;  %v2695_v9 = vld [vmem:[%s3273_s30 + $0x120] sm:$0xf]  ;;  %v2908_v11 = vld [vmem:[%s3273_s30 + $0x128] sm:$0xf0] }
  0xd7   : > { %881 = vmatmul.bf16.gmra.mxu1 %v2664_v6 }
  0xd8   : > { %970 = vmatmul.bf16.gmra.mxu2 %v2668_v10  ;;  %v1039_v14 = vmul.f32 %v3448_v12, %v3448_v12 }
  0xda   : > { %2838 = vmatmul.msk.f32.gmra.mxu3 %vm1078_vm0, %v1039_v14  ;;  %v2697_v14 = vld [vmem:[%s3273_s30 + $0x12c] sm:$0xf0] }
  0xdb   : > { %v931_v15 = vpop.f32.mrf.mxu2  ;;  %v755_v17 = vpop.f32.mrf.mxu0 }
  0xdc   : > { %v932_v16 = vadd.f32 %v931_v15, %v843_v13  ;;  %v844_v18 = vpop.f32.mrf.mxu1  ;;  %v756_v20 = vadd.f32 %v3430_v44, %v755_v17  ;;  %v2907_v13 = vld [vmem:[%s3273_s30 + $0x124] sm:$0xf]  ;;  %v2703_v15 = vld [vmem:[%s3273_s30 + $0x128] sm:$0xf] }
  0xdd   : > { %v2700_v21 = vor.u32 %v2907_v13, %v2697_v14 }
  0xde   : > { %v3453_v19 = vmax.f32 %v932_v16, 0.0  ;;  %v845_v28 = vadd.f32 %v844_v18, %v756_v20  ;;  %v2909_v16 = vld [vmem:[%s3273_s30 + $0x130] sm:$0xf0]  ;;  %v2696_v20 = vor.u32 %v2908_v11, %v2695_v9  ;;  %v2915_v9 = vld [vmem:[%s3273_s30 + $0x160] sm:$0xf0] }
  0xdf   : > { %v2704_v25 = vor.u32 %v2909_v16, %v2703_v15 }
  0xe0   : > { %v1040_v22 = vmul.f32 %v3453_v19, %v3453_v19 }
  0xe2   : > { %2839 = vmatmul.msk.f32.gmra.mxu3 %vm1078_vm0, %v1040_v22 }
  0xe3   : > { %v933_v29 = vpop.f32.mrf.mxu2  ;;  %v758_v33 = vpop.f32.mrf.mxu0 }
  0xe4   : > { %v934_v32 = vadd.f32 %v933_v29, %v845_v28  ;;  %v847_v34 = vpop.f32.mrf.mxu1  ;;  %v759_v36 = vadd.f32 %v3430_v44, %v758_v33 }
  0xe6   : > { %v3466_v37 = vmax.f32 %v934_v32, 0.0  ;;  %797 = vmatmul.bf16.gmra.mxu0 %v2672_v30  ;;  %v848_v38 = vadd.f32 %v847_v34, %v759_v36  ;;  %v2707_v36 = vld [vmem:[%s3273_s30 + $0x138] sm:$0xf] }
  0xe7   : > { %886 = vmatmul.bf16.gmra.mxu1 %v2676_v31 }
  0xe8   : > { %975 = vmatmul.bf16.gmra.mxu2 %v2680_v35  ;;  %v1041_v39 = vmul.f32 %v3466_v37, %v3466_v37 }
  0xea   : > { %2840 = vmatmul.msk.f32.gmra.mxu3 %vm1078_vm0, %v1041_v39  ;;  %v2911_v39 = vld [vmem:[%s3273_s30 + $0x140] sm:$0xf0] }
  0xeb   : > { %v936_v40 = vpop.f32.mrf.mxu2  ;;  %v760_v42 = vpop.f32.mrf.mxu0 }
  0xec   : > { %v937_v41 = vadd.f32 %v936_v40, %v848_v38  ;;  %v849_v43 = vpop.f32.mrf.mxu1  ;;  %v761_v46 = vadd.f32 %v3430_v44, %v760_v42  ;;  %v2910_v40 = vld [vmem:[%s3273_s30 + $0x13c] sm:$0xf]  ;;  %v2715_v42 = vld [vmem:[%s3273_s30 + $0x140] sm:$0xf] }
  0xee   : > { %v3471_v45 = vmax.f32 %v937_v41, 0.0  ;;  %v850_v54 = vadd.f32 %v849_v43, %v761_v46  ;;  %v2709_v41 = vld [vmem:[%s3273_s30 + $0x144] sm:$0xf0]  ;;  %v2912_v43 = vld [vmem:[%s3273_s30 + $0x148] sm:$0xf0] }
  0xef   : > { %v2712_v49 = vor.u32 %v2910_v40, %v2709_v41  ;;  %v2716_v53 = vor.u32 %v2912_v43, %v2715_v42 }
  0xf0   : > { %v1042_v48 = vmul.f32 %v3471_v45, %v3471_v45 }
  0xf2   : > { %2841 = vmatmul.msk.f32.gmra.mxu3 %vm1078_vm0, %v1042_v48  ;;  %v2708_v48 = vor.u32 %v2911_v39, %v2707_v36  ;;  %v2733_v36 = vld [vmem:[%s3273_s30 + $0x174] sm:$0xf0]  ;;  %v2918_v39 = vld [vmem:[%s3273_s30 + $0x178] sm:$0xf0] }
  0xf3   : > { %v938_v55 = vpop.f32.mrf.mxu2  ;;  %v763_v60 = vpop.f32.mrf.mxu0 }
  0xf4   : > { %v939_v59 = vadd.f32 %v938_v55, %v850_v54  ;;  %v852_v61 = vpop.f32.mrf.mxu1  ;;  %v764_v63 = vadd.f32 %v3430_v44, %v763_v60 }
  0xf6   : > { %v3484_v0 = vmax.f32 %v939_v59, 0.0  ;;  %802 = vmatmul.bf16.gmra.mxu0 %v2684_v56  ;;  %v853_v1 = vadd.f32 %v852_v61, %v764_v63 }
  0xf7   : > { %891 = vmatmul.bf16.gmra.mxu1 %v2688_v57 }
  0xf8   : > { %980 = vmatmul.bf16.gmra.mxu2 %v2692_v62  ;;  %v1043_v2 = vmul.f32 %v3484_v0, %v3484_v0 }
  0xfa   : > { %2842 = vmatmul.msk.f32.gmra.mxu3 %vm1078_vm0, %v1043_v2  ;;  %v2719_v2 = vld [vmem:[%s3273_s30 + $0x150] sm:$0xf] }
  0xfb   : > { %v941_v3 = vpop.f32.mrf.mxu2  ;;  %v765_v5 = vpop.f32.mrf.mxu0 }
  0xfc   : > { %v942_v4 = vadd.f32 %v941_v3, %v853_v1  ;;  %v854_v6 = vpop.f32.mrf.mxu1  ;;  %v766_v8 = vadd.f32 %v3430_v44, %v765_v5  ;;  %v2913_v5 = vld [vmem:[%s3273_s30 + $0x154] sm:$0xf] }
  0xfe   : > { %v3489_v7 = vmax.f32 %v942_v4, 0.0  ;;  %v855_v17 = vadd.f32 %v854_v6, %v766_v8  ;;  %v2914_v4 = vld [vmem:[%s3273_s30 + $0x158] sm:$0xf0]  ;;  %v2721_v6 = vld [vmem:[%s3273_s30 + $0x15c] sm:$0xf0] }
  0xff   : > { %v2727_v8 = vld [vmem:[%s3273_s30 + $0x158] sm:$0xf]  ;;  %v2720_v13 = vor.u32 %v2914_v4, %v2719_v2  ;;  %v2724_v14 = vor.u32 %v2913_v5, %v2721_v6 }
 0x100   : > { %v1044_v10 = vmul.f32 %v3489_v7, %v3489_v7 }
 0x102   : > { %2843 = vmatmul.msk.f32.gmra.mxu3 %vm1078_vm0, %v1044_v10 }
 0x103   : > { %v943_v18 = vpop.f32.mrf.mxu2  ;;  %v768_v23 = vpop.f32.mrf.mxu0 }
 0x104   : > { %v944_v22 = vadd.f32 %v943_v18, %v855_v17  ;;  %v857_v24 = vpop.f32.mrf.mxu1  ;;  %v769_v26 = vadd.f32 %v3430_v44, %v768_v23  ;;  %v2728_v18 = vor.u32 %v2915_v9, %v2727_v8 }
 0x106   : > { %v3502_v27 = vmax.f32 %v944_v22, 0.0  ;;  %807 = vmatmul.bf16.gmra.mxu0 %v2696_v20  ;;  %v858_v28 = vadd.f32 %v857_v24, %v769_v26 }
 0x107   : > { %896 = vmatmul.bf16.gmra.mxu1 %v2700_v21 }
 0x108   : > { %985 = vmatmul.bf16.gmra.mxu2 %v2704_v25  ;;  %v1045_v29 = vmul.f32 %v3502_v27, %v3502_v27 }
 0x10a   : > { %2844 = vmatmul.msk.f32.gmra.mxu3 %vm1078_vm0, %v1045_v29 }
 0x10b   : > { %v946_v30 = vpop.f32.mrf.mxu2  ;;  %v770_v32 = vpop.f32.mrf.mxu0 }
 0x10c   : > { %v947_v31 = vadd.f32 %v946_v30, %v858_v28  ;;  %v859_v33 = vpop.f32.mrf.mxu1  ;;  %v771_v35 = vadd.f32 %v3430_v44, %v770_v32 }
 0x10e   : > { %v3507_v34 = vmax.f32 %v947_v31, 0.0  ;;  %v860_v46 = vadd.f32 %v859_v33, %v771_v35  ;;  %v2731_v31 = vld [vmem:[%s3273_s30 + $0x168] sm:$0xf]  ;;  %v2917_v33 = vld [vmem:[%s3273_s30 + $0x170] sm:$0xf0] }
 0x10f   : > { %v2916_v35 = vld [vmem:[%s3273_s30 + $0x16c] sm:$0xf]  ;;  %v2732_v42 = vor.u32 %v2917_v33, %v2731_v31 }
 0x110   : > { %v1046_v38 = vmul.f32 %v3507_v34, %v3507_v34  ;;  %v2736_v43 = vor.u32 %v2916_v35, %v2733_v36 }
 0x112   : > { %2845 = vmatmul.msk.f32.gmra.mxu3 %vm1078_vm0, %v1046_v38  ;;  %v2739_v38 = vld [vmem:[%s3273_s30 + $0x170] sm:$0xf]  ;;  %s2547_s30 = sshll.u32 %s2539_s19, 5 }
 0x113   : > { %v948_v47 = vpop.f32.mrf.mxu2  ;;  %v773_v51 = vpop.f32.mrf.mxu0  ;;  %p218_p6 = scmp.lt.s32.totalorder %s2547_s30, 63 }
 0x114   : > { %v949_v50 = vadd.f32 %v948_v47, %v860_v46  ;;  %v862_v52 = vpop.f32.mrf.mxu1  ;;  %v774_v54 = vadd.f32 %v3430_v44, %v773_v51 }
 0x115   : > { %s4833_s30 = smov (!%p218_p6, %s2547_s30), 63 }
 0x116   : > { %v3520_v55 = vmax.f32 %v949_v50, 0.0  ;;  %812 = vmatmul.bf16.gmra.mxu0 %v2708_v48  ;;  %v863_v57 = vadd.f32 %v862_v52, %v774_v54  ;;  %s2548_s18 = sshll.u32 %s4833_s30, 3 }
 0x117   : > { %901 = vmatmul.bf16.gmra.mxu1 %v2712_v49  ;;  %v2740_v49 = vor.u32 %v2918_v39, %v2739_v38  ;;  %s3712_s13 = scalar_lea.vmem %s4805_s4, %s2548_s18 }
 0x118   : > { %v1047_v56 = vmul.f32 %v3520_v55, %v3520_v55  ;;  %990 = vmatmul.bf16.gmra.mxu2 %v2716_v53 }
 0x11a   : > { %2846 = vmatmul.msk.f32.gmra.mxu3 %vm1078_vm0, %v1047_v56 }
 0x11b   : > { %v951_v59 = vpop.f32.mrf.mxu2  ;;  %v775_v61 = vpop.f32.mrf.mxu0 }
 0x11c   : > { %v952_v60 = vadd.f32 %v951_v59, %v863_v57  ;;  %v864_v62 = vpop.f32.mrf.mxu1  ;;  %v776_v1 = vadd.f32 %v3430_v44, %v775_v61 }
 0x11e   : > { %v3525_v63 = vmax.f32 %v952_v60, 0.0  ;;  %v865_v10 = vadd.f32 %v864_v62, %v776_v1 }
 0x120   : > { %v1048_v3 = vmul.f32 %v3525_v63, %v3525_v63 }
 0x122   : > { %2847 = vmatmul.msk.f32.gmra.mxu3 %vm1078_vm0, %v1048_v3 }
 0x123   : > { %v953_v11 = vpop.f32.mrf.mxu2  ;;  %v778_v16 = vpop.f32.mrf.mxu0 }
 0x124   : > { %v954_v15 = vadd.f32 %v953_v11, %v865_v10  ;;  %v867_v17 = vpop.f32.mrf.mxu1  ;;  %v779_v20 = vadd.f32 %v3430_v44, %v778_v16 }
 0x126   : > { %v3538_v21 = vmax.f32 %v954_v15, 0.0  ;;  %817 = vmatmul.bf16.gmra.mxu0 %v2720_v13  ;;  %v868_v23 = vadd.f32 %v867_v17, %v779_v20 }
 0x127   : > { %906 = vmatmul.bf16.gmra.mxu1 %v2724_v14 }
 0x128   : > { %v1049_v22 = vmul.f32 %v3538_v21, %v3538_v21  ;;  %995 = vmatmul.bf16.gmra.mxu2 %v2728_v18 }
 0x12a   : > { %2848 = vmatmul.msk.f32.gmra.mxu3 %vm1078_vm0, %v1049_v22 }
 0x12b   : > { %v956_v24 = vpop.f32.mrf.mxu2  ;;  %v780_v26 = vpop.f32.mrf.mxu0 }
 0x12c   : > { %v957_v25 = vadd.f32 %v956_v24, %v868_v23  ;;  %v869_v28 = vpop.f32.mrf.mxu1  ;;  %v781_v30 = vadd.f32 %v3430_v44, %v780_v26 }
 0x12e   : > { %v3543_v29 = vmax.f32 %v957_v25, 0.0  ;;  %v870_v40 = vadd.f32 %v869_v28, %v781_v30 }
 0x130   : > { %v1050_v32 = vmul.f32 %v3543_v29, %v3543_v29 }
 0x132   : > { %2849 = vmatmul.msk.f32.gmra.mxu3 %vm1078_vm0, %v1050_v32 }
 0x133   : > { %v958_v41 = vpop.f32.mrf.mxu2  ;;  %v783_v47 = vpop.f32.mrf.mxu0 }
 0x134   : > { %v959_v46 = vadd.f32 %v958_v41, %v870_v40  ;;  %v872_v48 = vpop.f32.mrf.mxu1  ;;  %v784_v50 = vadd.f32 %v3430_v44, %v783_v47 }
 0x136   : > { %v3556_v51 = vmax.f32 %v959_v46, 0.0  ;;  %822 = vmatmul.bf16.gmra.mxu0 %v2732_v42  ;;  %v873_v53 = vadd.f32 %v872_v48, %v784_v50 }
 0x137   : > { %911 = vmatmul.bf16.gmra.mxu1 %v2736_v43 }
 0x138   : > { %v1051_v52 = vmul.f32 %v3556_v51, %v3556_v51  ;;  %1000 = vmatmul.bf16.gmra.mxu2 %v2740_v49 }
 0x13a   : > { %2850 = vmatmul.msk.f32.gmra.mxu3 %vm1078_vm0, %v1051_v52 }
 0x13b   : > { %v961_v54 = vpop.f32.mrf.mxu2  ;;  %v785_v57 = vpop.f32.mrf.mxu0 }
 0x13c   : > { %v962_v56 = vadd.f32 %v961_v54, %v873_v53  ;;  %v874_v59 = vpop.f32.mrf.mxu1  ;;  %v786_v61 = vadd.f32 %v3430_v44, %v785_v57 }
 0x13e   : > { %v3561_v60 = vmax.f32 %v962_v56, 0.0  ;;  %v875_v1 = vadd.f32 %v874_v59, %v786_v61 }
 0x140   : > { %v1052_v62 = vmul.f32 %v3561_v60, %v3561_v60 }
 0x142   : > { %2851 = vmatmul.msk.f32.gmra.mxu3 %vm1078_vm0, %v1052_v62 }
 0x143   : > { %v963_v2 = vpop.f32.mrf.mxu2  ;;  %v788_v4 = vpop.f32.mrf.mxu0 }
 0x144   : > { %v964_v3 = vadd.f32 %v963_v2, %v875_v1  ;;  %v877_v5 = vpop.f32.mrf.mxu1  ;;  %v789_v6 = vadd.f32 %v3430_v44, %v788_v4 }
 0x146   : > { %v3568_v8 = vmax.f32 %v964_v3, 0.0  ;;  %v878_v10 = vadd.f32 %v877_v5, %v789_v6 }
 0x148   : > { %v1053_v9 = vmul.f32 %v3568_v8, %v3568_v8 }
 0x14a   : > { %2852 = vmatmul.msk.f32.gmra.mxu3 %vm1078_vm0, %v1053_v9 }
 0x14b   : > { %v966_v11 = vpop.f32.mrf.mxu2  ;;  %v790_v14 = vpop.f32.mrf.mxu0 }
 0x14c   : > { %v967_v13 = vadd.f32 %v966_v11, %v878_v10  ;;  %v879_v15 = vpop.f32.mrf.mxu1  ;;  %v791_v17 = vadd.f32 %v3430_v44, %v790_v14 }
 0x14e   : > { %v3573_v16 = vmax.f32 %v967_v13, 0.0  ;;  %v880_v20 = vadd.f32 %v879_v15, %v791_v17 }
 0x150   : > { %v1054_v18 = vmul.f32 %v3573_v16, %v3573_v16 }
 0x152   : > { %2853 = vmatmul.msk.f32.gmra.mxu3 %vm1078_vm0, %v1054_v18 }
 0x153   : > { %v968_v22 = vpop.f32.mrf.mxu2  ;;  %v793_v24 = vpop.f32.mrf.mxu0 }
 0x154   : > { %v969_v23 = vadd.f32 %v968_v22, %v880_v20  ;;  %v882_v25 = vpop.f32.mrf.mxu1  ;;  %v794_v26 = vadd.f32 %v3430_v44, %v793_v24 }
 0x155   : > { %v1192_v28 = vpop.f32.mrf.mxu3 }
 0x156   : > { %v3580_v30 = vmax.f32 %v969_v23, 0.0  ;;  %v1288_v31 = vmul.f32 2e-05, %v1192_v28  ;;  %v883_v33 = vadd.f32 %v882_v25, %v794_v26 }
 0x158   : > { %v1055_v32 = vmul.f32 %v3580_v30, %v3580_v30  ;;  %v3584_v35 = vadd.f32 2.0, %v1288_v31 }
 0x15a   : > { %2988 = vrsqrt.f32 %v3584_v35  ;;  %2854 = vmatmul.msk.f32.gmra.mxu3 %vm1078_vm0, %v1055_v32  ;;  %vm1679_vm1 = vcmp.eq.f32.partialorder %v3584_v35, inf  ;;  %v1682_v18 = vand.u32 2147483648, %v3584_v35  ;;  %vm1681_vm2 = vcmp.eq.f32.partialorder %v3584_v35, 0.0 }
 0x15b   : > { %v971_v36 = vpop.f32.mrf.mxu2  ;;  %v795_v39 = vpop.f32.mrf.mxu0  ;;  %vm1358_vm8 = vweird.f32 %v3584_v35 }
 0x15c   : > { %v972_v38 = vadd.f32 %v971_v36, %v883_v33  ;;  %v884_v40 = vpop.f32.mrf.mxu1  ;;  %v796_v43 = vadd.f32 %v3430_v44, %v795_v39 }
 0x15d   : > { %v1195_v41 = vpop.f32.mrf.mxu3 }
 0x15e   : > { %v3588_v42 = vmax.f32 %v972_v38, 0.0  ;;  %v1289_v46 = vmul.f32 2e-05, %v1195_v41  ;;  %v885_v52 = vadd.f32 %v884_v40, %v796_v43 }
 0x160   : > { %v3591_v47 = vpop.eup %2988  ;;  %v1056_v48 = vmul.f32 %v3588_v42, %v3588_v42  ;;  %v3595_v49 = vadd.f32 2.0, %v1289_v46 }
 0x161   : > { %v1353_v50 = vmul.f32 %v3591_v47, %v3584_v35  ;;  %vm1359_vm5 = vweird.f32 %v3591_v47 }
 0x162   : > { %2990 = vrsqrt.f32 %v3595_v49  ;;  %2855 = vmatmul.msk.f32.gmra.mxu3 %vm1078_vm0, %v1056_v48  ;;  %vm1691_vm3 = vcmp.eq.f32.partialorder %v3595_v49, inf  ;;  %vm1693_vm4 = vcmp.eq.f32.partialorder %v3595_v49, 0.0  ;;  %vm1360_vm10 = vmor %vm1358_vm8, %vm1359_vm5  ;;  %vm1368_vm13 = vweird.f32 %v3595_v49 }
 0x163   : > { %v1354_v53 = vmul.f32 %v3591_v47, %v1353_v50  ;;  %v973_v54 = vpop.f32.mrf.mxu2  ;;  %v798_v57 = vpop.f32.mrf.mxu0 }
 0x164   : > { %v974_v56 = vadd.f32 %v973_v54, %v885_v52  ;;  %v887_v59 = vpop.f32.mrf.mxu1  ;;  %v799_v62 = vadd.f32 %v3430_v44, %v798_v57 }
 0x165   : > { %v1355_v61 = vmul.f32 0.5, %v1354_v53  ;;  %v1198_v1 = vpop.f32.mrf.mxu3  ;;  %v1694_v53 = vand.u32 2147483648, %v3595_v49 }
 0x166   : > { %v3603_v2 = vmax.f32 %v974_v56, 0.0  ;;  %v1290_v3 = vmul.f32 2e-05, %v1198_v1  ;;  %v888_v9 = vadd.f32 %v887_v59, %v799_v62 }
 0x167   : > { %v1356_v4 = vsub.f32 1.5, %v1355_v61 }
 0x168   : > { %v3605_v5 = vpop.eup %2990  ;;  %v1057_v6 = vmul.f32 %v3603_v2, %v3603_v2  ;;  %v3609_v10 = vadd.f32 2.0, %v1290_v3 }
 0x169   : > { %v3612_v11 = vmul.f32 %v3591_v47, %v1356_v4  ;;  %v1363_v13 = vmul.f32 %v3605_v5, %v3595_v49  ;;  %vm1369_vm14 = vweird.f32 %v3605_v5 }
 0x16a   : > { %2992 = vrsqrt.f32 %v3609_v10  ;;  %2856 = vmatmul.msk.f32.gmra.mxu3 %vm1078_vm0, %v1057_v6  ;;  %vm1703_vm6 = vcmp.eq.f32.partialorder %v3609_v10, inf  ;;  %vm1705_vm9 = vcmp.eq.f32.partialorder %v3609_v10, 0.0 }
 0x16b   : > { %v1678_v14 = vmul.f32 %v3612_v11, %v3584_v35  ;;  %v1364_v15 = vmul.f32 %v3605_v5, %v1363_v13  ;;  %v976_v17 = vpop.f32.mrf.mxu2  ;;  %v800_v22 = vpop.f32.mrf.mxu0 }
 0x16c   : > { %v977_v20 = vadd.f32 %v976_v17, %v888_v9  ;;  %v889_v23 = vpop.f32.mrf.mxu1  ;;  %v801_v32 = vadd.f32 %v3430_v44, %v800_v22 }
 0x16d   : > { %v1680_v24 = vsel %vm1679_vm1, %v3584_v35, %v1678_v14  ;;  %v1365_v25 = vmul.f32 0.5, %v1364_v15  ;;  %v1201_v26 = vpop.f32.mrf.mxu3 }
 0x16e   : > { %v3625_v28 = vsel %vm1681_vm2, %v1682_v18, %v1680_v24  ;;  %v3627_v31 = vmax.f32 %v977_v20, 0.0  ;;  %v1291_v33 = vmul.f32 2e-05, %v1201_v26  ;;  %v890_v46 = vadd.f32 %v889_v23, %v801_v32 }
 0x16f   : > { %2994 = vrsqrt.f32 %v3625_v28  ;;  %v1366_v36 = vsub.f32 1.5, %v1365_v25  ;;  %vm2062_vm11 = vweird.f32 %v3625_v28 }
 0x170   : > { %v3631_v38 = vpop.eup %2992  ;;  %v1058_v39 = vmul.f32 %v3627_v31, %v3627_v31  ;;  %v3635_v40 = vadd.f32 2.0, %v1291_v33 }
 0x171   : > { %v3638_v41 = vmul.f32 %v3605_v5, %v1366_v36  ;;  %v1373_v43 = vmul.f32 %v3631_v38, %v3609_v10 }
 0x172   : > { %2996 = vrsqrt.f32 %v3635_v40  ;;  %2857 = vmatmul.msk.f32.gmra.mxu3 %vm1078_vm0, %v1058_v39  ;;  %v1706_v39 = vand.u32 2147483648, %v3609_v10  ;;  %vm1715_vm15 = vcmp.eq.f32.partialorder %v3635_v40, inf }
 0x173   : > { %v1690_v48 = vmul.f32 %v3638_v41, %v3595_v49  ;;  %v1374_v50 = vmul.f32 %v3631_v38, %v1373_v43  ;;  %v978_v52 = vpop.f32.mrf.mxu2  ;;  %v803_v56 = vpop.f32.mrf.mxu0 }
 0x174   : > { %v979_v54 = vadd.f32 %v978_v52, %v890_v46  ;;  %v892_v57 = vpop.f32.mrf.mxu1  ;;  %v804_v13 = vadd.f32 %v3430_v44, %v803_v56 }
 0x175   : > { %v2995_v59 = vpop.eup %2994  ;;  %v1692_v61 = vsel %vm1691_vm3, %v3595_v49, %v1690_v48  ;;  %v1375_v62 = vmul.f32 0.5, %v1374_v50  ;;  %v1204_v1 = vpop.f32.mrf.mxu3  ;;  %vm1717_vm3 = vcmp.eq.f32.partialorder %v3635_v40, 0.0 }
 0x176   : > { %v2057_v3 = vmul.f32 %v2995_v59, %v3625_v28  ;;  %v3654_v4 = vsel %vm1693_vm4, %v1694_v53, %v1692_v61  ;;  %v3656_v6 = vmax.f32 %v979_v54, 0.0  ;;  %v1292_v18 = vmul.f32 2e-05, %v1204_v1  ;;  %vm1370_vm4 = vmor %vm1368_vm13, %vm1369_vm14 }
 0x177   : > { %2998 = vrsqrt.f32 %v3654_v4  ;;  %v1376_v9 = vsub.f32 1.5, %v1375_v62  ;;  %v893_v32 = vadd.f32 %v892_v57, %v804_v13  ;;  %vm2063_vm7 = vweird.f32 %v2995_v59 }
 0x178   : > { %v3660_v14 = vpop.eup %2996  ;;  %v2058_v15 = vmul.f32 %v2995_v59, %v2057_v3  ;;  %v1059_v17 = vmul.f32 %v3656_v6, %v3656_v6  ;;  %v3670_v24 = vadd.f32 2.0, %v1292_v18  ;;  %vm2064_vm12 = vmor %vm2062_vm11, %vm2063_vm7  ;;  %v1361_v62 = vsel %vm1360_vm10, %v3591_v47, %v3612_v11 }
 0x179   : > { %v3665_v20 = vmul.f32 %v3631_v38, %v1376_v9  ;;  %v1383_v22 = vmul.f32 %v3660_v14, %v3635_v40  ;;  %vm2072_vm2 = vweird.f32 %v3654_v4  ;;  %vm1379_vm7 = vweird.f32 %v3631_v38 }
 0x17a   : > { %v2059_v23 = vmul.f32 0.5, %v2058_v15  ;;  %2858 = vmatmul.msk.f32.gmra.mxu3 %vm1078_vm0, %v1059_v17  ;;  %3000 = vrsqrt.f32 %v3670_v24  ;;  %vm1389_vm8 = vweird.f32 %v3660_v14  ;;  %vm1388_vm14 = vweird.f32 %v3635_v40 }
 0x17b   : > { %v1702_v25 = vmul.f32 %v3665_v20, %v3609_v10  ;;  %v1384_v26 = vmul.f32 %v3660_v14, %v1383_v22  ;;  %v981_v33 = vpop.f32.mrf.mxu2  ;;  %v805_v43 = vpop.f32.mrf.mxu0 }
 0x17c   : > { %v2060_v36 = vsub.f32 1.5, %v2059_v23  ;;  %v894_v46 = vpop.f32.mrf.mxu1  ;;  %v982_v61 = vadd.f32 %v981_v33, %v893_v32  ;;  %v806_v11 = vadd.f32 %v3430_v44, %v805_v43  ;;  %v1718_v23 = vand.u32 2147483648, %v3635_v40 }
 0x17d   : > { %v3682_v48 = vpop.eup %2998  ;;  %v1704_v50 = vsel %vm1703_vm6, %v3609_v10, %v1702_v25  ;;  %v1385_v52 = vmul.f32 0.5, %v1384_v26  ;;  %v1207_v53 = vpop.f32.mrf.mxu3  ;;  %vm1378_vm6 = vweird.f32 %v3609_v10 }
 0x17e   : > { %v2061_v54 = vmul.f32 %v2995_v59, %v2060_v36  ;;  %v2067_v56 = vmul.f32 %v3682_v48, %v3654_v4  ;;  %v3692_v57 = vsel %vm1705_vm9, %v1706_v39, %v1704_v50  ;;  %v1293_v3 = vmul.f32 2e-05, %v1207_v53 }
 0x17f   : > { %3002 = vrsqrt.f32 %v3692_v57  ;;  %v1386_v35 = vsub.f32 1.5, %v1385_v52  ;;  %v3705_v15 = vmax.f32 %v982_v61, 0.0  ;;  %vm2073_vm1 = vweird.f32 %v3682_v48 }
 0x180   : > { %v2065_v1 = vsel %vm2064_vm12, %v2995_v59, %v2061_v54  ;;  %v2068_v28 = vmul.f32 %v3682_v48, %v2067_v56  ;;  %v3707_v17 = vpop.eup %3000  ;;  %v3716_v59 = vadd.f32 2.0, %v1293_v3  ;;  %v895_v56 = vadd.f32 %v894_v46, %v806_v11  ;;  %vm2074_vm5 = vmor %vm2072_vm2, %vm2073_vm1 }
 0x181   : > { %v2376_v9 = vmul.f32 %v2065_v1, %v1361_v62  ;;  %v3703_v13 = vmul.f32 %v3660_v14, %v1386_v35  ;;  %v1393_v25 = vmul.f32 %v3707_v17, %v3670_v24  ;;  %v1060_v33 = vmul.f32 %v3705_v15, %v3705_v15  ;;  %vm1380_vm12 = vmor %vm1378_vm6, %vm1379_vm7 }
 0x182   : > { %v2069_v47 = vmul.f32 0.5, %v2068_v28  ;;  %3004 = vrsqrt.f32 %v3716_v59  ;;  %v1371_v35 = vsel %vm1370_vm4, %v3605_v5, %v3638_v41  ;;  %vm1727_vm9 = vcmp.eq.f32.partialorder %v3670_v24, inf  ;;  %vm3809_vm1 = vmor %vm1388_vm14, %vm1389_vm8 }
 0x183   : > { %v2408_v18 = vmul.f32 %v2376_v9, %v3435_v58  ;;  %v1714_v22 = vmul.f32 %v3703_v13, %v3635_v40  ;;  %v983_v26 = vpop.f32.mrf.mxu2  ;;  %v808_v36 = vpop.f32.mrf.mxu0  ;;  %v1394_v50 = vmul.f32 %v3707_v17, %v1393_v25  ;;  %2859 = vmatmul.msk.f32.gmra.mxu3 %vm1078_vm0, %v1060_v33  ;;  %vm2082_vm11 = vweird.f32 %v3692_v57 }
 0x184   : > { %v2070_v32 = vsub.f32 1.5, %v2069_v47  ;;  %v897_v39 = vpop.f32.mrf.mxu1  ;;  %v984_v46 = vadd.f32 %v983_v26, %v895_v56  ;;  %v809_v3 = vadd.f32 %v3430_v44, %v808_v36  ;;  %vm1739_vm2 = vcmp.eq.f32.partialorder %v3716_v59, inf }
 0x185   : > { %v3728_v58 = vpop.eup %3002  ;;  %2440 = vst.msk [vmem:[%s3712_s13] sm:$0xff] %vm1078_vm0, %v2408_v18  ;;  %v1716_v43 = vsel %vm1715_vm15, %v3635_v40, %v1714_v22  ;;  %v1210_v52 = vpop.f32.mrf.mxu3  ;;  %v1395_v49 = vmul.f32 0.5, %v1394_v50  ;;  %vm1729_vm15 = vcmp.eq.f32.partialorder %v3670_v24, 0.0  ;;  %vm1399_vm7 = vweird.f32 %v3707_v17 }
 0x186   : > { %v2071_v53 = vmul.f32 %v3682_v48, %v2070_v32  ;;  %v2077_v54 = vmul.f32 %v3728_v58, %v3692_v57  ;;  %v3745_v4 = vsel %vm1717_vm3, %v1718_v23, %v1716_v43  ;;  %v1294_v9 = vmul.f32 2e-05, %v1210_v52 }
 0x187   : > { %3006 = vrsqrt.f32 %v3745_v4  ;;  %v1396_v28 = vsub.f32 1.5, %v1395_v49  ;;  %v3762_v18 = vmax.f32 %v984_v46, 0.0  ;;  %vm2083_vm10 = vweird.f32 %v3728_v58 }
 0x188   : > { %v2075_v61 = vsel %vm2074_vm5, %v3682_v48, %v2071_v53  ;;  %v2078_v62 = vmul.f32 %v3728_v58, %v2077_v54  ;;  %v3758_v47 = vpop.eup %3004  ;;  %v1730_v48 = vand.u32 2147483648, %v3670_v24  ;;  %v3774_v32 = vadd.f32 2.0, %v1294_v9  ;;  %vm2084_vm13 = vmor %vm2082_vm11, %vm2083_vm10 }
 0x189   : > { %v2377_v1 = vmul.f32 %v2075_v61, %v1371_v35  ;;  %v3766_v41 = vmul.f32 %v3707_v17, %v1396_v28  ;;  %v1403_v22 = vmul.f32 %v3758_v47, %v3716_v59  ;;  %v1061_v26 = vmul.f32 %v3762_v18, %v3762_v18 }
 0x18a   : > { %v2079_v11 = vmul.f32 0.5, %v2078_v62  ;;  %v898_v52 = vadd.f32 %v897_v39, %v809_v3  ;;  %3008 = vrsqrt.f32 %v3774_v32  ;;  %v1381_v49 = vsel %vm1380_vm12, %v3631_v38, %v3665_v20 }
 0x18b   : > { %v2409_v5 = vmul.f32 %v2377_v1, %v3448_v12  ;;  %v986_v23 = vpop.f32.mrf.mxu2  ;;  %v810_v33 = vpop.f32.mrf.mxu0  ;;  %v1726_v43 = vmul.f32 %v3766_v41, %v3670_v24  ;;  %v1404_v50 = vmul.f32 %v3758_v47, %v1403_v22  ;;  %2860 = vmatmul.msk.f32.gmra.mxu3 %vm1078_vm0, %v1061_v26  ;;  %v1391_v38 = vsel %vm3809_vm1, %v3660_v14, %v3703_v13 }
 0x18c   : > { %v2080_v25 = vsub.f32 1.5, %v2079_v11  ;;  %v899_v36 = vpop.f32.mrf.mxu1  ;;  %v811_v57 = vadd.f32 %v3430_v44, %v810_v33  ;;  %vm2092_vm4 = vweird.f32 %v3745_v4  ;;  %vm1741_vm5 = vcmp.eq.f32.partialorder %v3716_v59, 0.0 }
 0x18d   : > { %v3776_v12 = vpop.eup %3006  ;;  %2441 = vst.msk [vmem:[%s3712_s13 + $0x8] sm:$0xff] %vm1078_vm0, %v2409_v5  ;;  %v1213_v53 = vpop.f32.mrf.mxu3  ;;  %v1728_v10 = vsel %vm1727_vm9, %v3670_v24, %v1726_v43  ;;  %v1405_v39 = vmul.f32 0.5, %v1404_v50  ;;  %v1742_v43 = vand.u32 2147483648, %v3716_v59  ;;  %vm1398_vm8 = vweird.f32 %v3670_v24 }
 0x18e   : > { %v2081_v54 = vmul.f32 %v3728_v58, %v2080_v25  ;;  %v2087_v56 = vmul.f32 %v3776_v12, %v3745_v4  ;;  %v3805_v62 = vsel %vm1729_vm15, %v1730_v48, %v1728_v10  ;;  %v900_v28 = vadd.f32 %v899_v36, %v811_v57  ;;  %vm3878_vm9 = vmor %vm1398_vm8, %vm1399_vm7 }
 0x18f   : > { %3010 = vrsqrt.f32 %v3805_v62  ;;  %v1406_v1 = vsub.f32 1.5, %v1405_v39  ;;  %v1295_v11 = vmul.f32 2e-05, %v1213_v53  ;;  %vm2093_vm3 = vweird.f32 %v3776_v12 }
 0x190   : > { %v2085_v35 = vsel %vm2084_vm13, %v3728_v58, %v2081_v54  ;;  %v2088_v61 = vmul.f32 %v3776_v12, %v2087_v56  ;;  %v987_v58 = vadd.f32 %v986_v23, %v898_v52  ;;  %v3823_v48 = vpop.eup %3008  ;;  %vm2094_vm6 = vmor %vm2092_vm4, %vm2093_vm3  ;;  %vm2102_vm11 = vweird.f32 %v3805_v62 }
 0x191   : > { %v2378_v46 = vmul.f32 %v2085_v35, %v1381_v49  ;;  %v3820_v9 = vmul.f32 %v3758_v47, %v1406_v1  ;;  %v1413_v26 = vmul.f32 %v3823_v48, %v3774_v32  ;;  %v3840_v52 = vadd.f32 2.0, %v1295_v11 }
 0x192   : > { %v2089_v20 = vmul.f32 0.5, %v2088_v61  ;;  %v3826_v25 = vmax.f32 %v987_v58, 0.0  ;;  %vm1751_vm12 = vcmp.eq.f32.partialorder %v3774_v32, inf  ;;  %vm1753_vm14 = vcmp.eq.f32.partialorder %v3774_v32, 0.0 }
 0x193   : > { %v2410_v3 = vmul.f32 %v2378_v46, %v3453_v19  ;;  %v988_v5 = vpop.f32.mrf.mxu2  ;;  %v813_v13 = vpop.f32.mrf.mxu0  ;;  %v1738_v19 = vmul.f32 %v3820_v9, %v3716_v59  ;;  %v1414_v54 = vmul.f32 %v3823_v48, %v1413_v26  ;;  %vm1409_vm15 = vweird.f32 %v3758_v47 }
 0x194   : > { %v2090_v22 = vsub.f32 1.5, %v2089_v20  ;;  %v989_v14 = vadd.f32 %v988_v5, %v900_v28  ;;  %v902_v23 = vpop.f32.mrf.mxu1  ;;  %v1062_v50 = vmul.f32 %v3826_v25, %v3826_v25  ;;  %v814_v57 = vadd.f32 %v3430_v44, %v813_v13 }
 0x195   : > { %2442 = vst.msk [vmem:[%s3712_s13 + $0x10] sm:$0xff] %vm1078_vm0, %v2410_v3  ;;  %v1216_v33 = vpop.f32.mrf.mxu3  ;;  %v3011_v53 = vpop.eup %3010  ;;  %v1740_v4 = vsel %vm1739_vm2, %v3716_v59, %v1738_v19  ;;  %v1415_v46 = vmul.f32 0.5, %v1414_v54  ;;  %v1401_v19 = vsel %vm3878_vm9, %v3707_v17, %v3766_v41  ;;  %vm1408_vm2 = vweird.f32 %v3716_v59 }
 0x196   : > { %v2091_v36 = vmul.f32 %v3776_v12, %v2090_v22  ;;  %v3848_v56 = vmax.f32 %v989_v14, 0.0  ;;  %v2097_v39 = vmul.f32 %v3011_v53, %v3805_v62  ;;  %v3853_v49 = vsel %vm1741_vm5, %v1742_v43, %v1740_v4  ;;  %2861 = vmatmul.msk.f32.gmra.mxu3 %vm1078_vm0, %v1062_v50  ;;  %vm3921_vm4 = vmor %vm1408_vm2, %vm1409_vm15 }
 0x197   : > { %v1296_v35 = vmul.f32 2e-05, %v1216_v33  ;;  %3012 = vrsqrt.f32 %v3853_v49  ;;  %v1416_v44 = vsub.f32 1.5, %v1415_v46  ;;  %v903_v28 = vadd.f32 %v902_v23, %v814_v57 }
 0x198   : > { %v2095_v10 = vsel %vm2094_vm6, %v3776_v12, %v2091_v36  ;;  %v2098_v40 = vmul.f32 %v3011_v53, %v2097_v39  ;;  %3014 = vrsqrt.f32 %v3840_v52  ;;  %v1063_v58 = vmul.f32 %v3848_v56, %v3848_v56 }
 0x199   : > { %v2379_v61 = vmul.f32 %v2095_v10, %v1391_v38  ;;  %v3862_v3 = vadd.f32 2.0, %v1296_v35  ;;  %v3868_v5 = vmul.f32 %v3823_v48, %v1416_v44  ;;  %vm2103_vm10 = vweird.f32 %v3011_v53 }
 0x19a   : > { %v2099_v20 = vmul.f32 0.5, %v2098_v40  ;;  %v1754_v50 = vand.u32 2147483648, %v3774_v32  ;;  %vm2104_vm13 = vmor %vm2102_vm11, %vm2103_vm10  ;;  %vm2112_vm3 = vweird.f32 %v3853_v49  ;;  %vm1418_vm6 = vweird.f32 %v3774_v32 }
 0x19b   : > { %v2411_v1 = vmul.f32 %v2379_v61, %v3466_v37  ;;  %v991_v12 = vpop.f32.mrf.mxu2  ;;  %v815_v38 = vpop.f32.mrf.mxu0  ;;  %v3873_v37 = vld [vmem:[%s4803_s2] ss:$0 sm:$0xff]  ;;  %3016 = vrsqrt.f32 %v3862_v3  ;;  %v1750_v26 = vmul.f32 %v3868_v5, %v3774_v32  ;;  %vm1763_vm7 = vcmp.eq.f32.partialorder %v3840_v52, inf }
 0x19c   : > { %v904_v11 = vpop.f32.mrf.mxu1  ;;  %v816_v22 = vadd.f32 %v3873_v37, %v815_v38  ;;  %v2100_v23 = vsub.f32 1.5, %v2099_v20  ;;  %v992_v4 = vadd.f32 %v991_v12, %v903_v28  ;;  %vm1765_vm8 = vcmp.eq.f32.partialorder %v3840_v52, 0.0 }
 0x19d   : > { %2443 = vst.msk [vmem:[%s3712_s13 + $0x18] sm:$0xff] %vm1078_vm0, %v2411_v1  ;;  %v1219_v14 = vpop.f32.mrf.mxu3  ;;  %v3013_v24 = vpop.eup %3012  ;;  %v1752_v17 = vsel %vm1751_vm12, %v3774_v32, %v1750_v26  ;;  %vm1419_vm9 = vweird.f32 %v3823_v48  ;;  %vm1775_vm10 = vcmp.eq.f32.partialorder %v3862_v3, inf }
 0x19e   : > { %v3891_v33 = vpop.eup %3014  ;;  %v2101_v36 = vmul.f32 %v3011_v53, %v2100_v23  ;;  %v2107_v43 = vmul.f32 %v3013_v24, %v3853_v49  ;;  %2862 = vmatmul.msk.f32.gmra.mxu3 %vm1078_vm0, %v1063_v58  ;;  %v905_v62 = vadd.f32 %v904_v11, %v816_v22  ;;  %v3900_v10 = vsel %vm1753_vm14, %v1754_v50, %v1752_v17  ;;  %vm3981_vm14 = vmor %vm1418_vm6, %vm1419_vm9 }
 0x19f   : > { %v1423_v41 = vmul.f32 %v3891_v33, %v3840_v52  ;;  %v3902_v39 = vmax.f32 %v992_v4, 0.0  ;;  %3018 = vrsqrt.f32 %v3900_v10  ;;  %v1297_v12 = vmul.f32 2e-05, %v1219_v14 }
 0x1a0   : > { %v2105_v54 = vsel %vm2104_vm13, %v3011_v53, %v2101_v36  ;;  %v2108_v57 = vmul.f32 %v3013_v24, %v2107_v43  ;;  %vm2113_vm1 = vweird.f32 %v3013_v24  ;;  %v1411_v17 = vsel %vm3921_vm4, %v3758_v47, %v3820_v9 }
 0x1a1   : > { %v2380_v35 = vmul.f32 %v2105_v54, %v1401_v19  ;;  %v1424_v61 = vmul.f32 %v3891_v33, %v1423_v41  ;;  %v3906_v40 = vpop.eup %3016  ;;  %v1064_v44 = vmul.f32 %v3902_v39, %v3902_v39  ;;  %v3914_v13 = vadd.f32 2.0, %v1297_v12  ;;  %vm2114_vm5 = vmor %vm2112_vm3, %vm2113_vm1 }
 0x1a2   : > { %v2109_v1 = vmul.f32 0.5, %v2108_v57  ;;  %v1433_v38 = vmul.f32 %v3906_v40, %v3862_v3  ;;  %vm2122_vm12 = vweird.f32 %v3900_v10  ;;  %vm1777_vm13 = vcmp.eq.f32.partialorder %v3862_v3, 0.0 }
 0x1a3   : > { %v993_v46 = vpop.f32.mrf.mxu2  ;;  %v818_v20 = vpop.f32.mrf.mxu0  ;;  %v2412_v58 = vmul.f32 %v2380_v35, %v3471_v45  ;;  %v1425_v28 = vmul.f32 0.5, %v1424_v61  ;;  %3020 = vrsqrt.f32 %v3914_v13  ;;  %v1421_v32 = vsel %vm3981_vm14, %v3823_v48, %v3868_v5 }
 0x1a4   : > { %v994_v53 = vadd.f32 %v993_v46, %v905_v62  ;;  %v2110_v22 = vsub.f32 1.5, %v2109_v1  ;;  %v907_v23 = vpop.f32.mrf.mxu1  ;;  %v1434_v45 = vmul.f32 %v3906_v40, %v1433_v38  ;;  %v819_v4 = vadd.f32 %v3873_v37, %v818_v20 }
 0x1a5   : > { %v1222_v11 = vpop.f32.mrf.mxu3  ;;  %2444 = vst.msk [vmem:[%s3712_s13 + $0x20] sm:$0xff] %vm1078_vm0, %v2412_v58  ;;  %v1426_v14 = vsub.f32 1.5, %v1425_v28  ;;  %v3929_v50 = vpop.eup %3018  ;;  %v1766_v1 = vand.u32 2147483648, %v3840_v52  ;;  %vm1428_vm1 = vweird.f32 %v3840_v52  ;;  %vm1429_vm2 = vweird.f32 %v3891_v33 }
 0x1a6   : > { %v2111_v26 = vmul.f32 %v3013_v24, %v2110_v22  ;;  %2863 = vmatmul.msk.f32.gmra.mxu3 %vm1078_vm0, %v1064_v44  ;;  %v3927_v36 = vmax.f32 %v994_v53, 0.0  ;;  %v1298_v43 = vmul.f32 2e-05, %v1222_v11  ;;  %v1435_v49 = vmul.f32 0.5, %v1434_v45  ;;  %vm4031_vm4 = vmor %vm1428_vm1, %vm1429_vm2 }
 0x1a7   : > { %v3934_v59 = vmul.f32 %v3891_v33, %v1426_v14  ;;  %v2117_v62 = vmul.f32 %v3929_v50, %v3900_v10  ;;  %v908_v20 = vadd.f32 %v907_v23, %v819_v4  ;;  %vm2123_vm11 = vweird.f32 %v3929_v50 }
 0x1a8   : > { %v2115_v41 = vsel %vm2114_vm5, %v3013_v24, %v2111_v26  ;;  %v1436_v35 = vsub.f32 1.5, %v1435_v49  ;;  %v1065_v47 = vmul.f32 %v3927_v36, %v3927_v36  ;;  %v3951_v9 = vadd.f32 2.0, %v1298_v43  ;;  %vm2124_vm15 = vmor %vm2122_vm12, %vm2123_vm11 }
 0x1a9   : > { %v2381_v54 = vmul.f32 %v2115_v41, %v1411_v17  ;;  %v1762_v57 = vmul.f32 %v3934_v59, %v3840_v52  ;;  %v2118_v46 = vmul.f32 %v3929_v50, %v2117_v62  ;;  %v3958_v28 = vpop.eup %3020  ;;  %v1778_v14 = vand.u32 2147483648, %v3862_v3 }
 0x1aa   : > { %v3956_v53 = vmul.f32 %v3906_v40, %v1436_v35  ;;  %3022 = vrsqrt.f32 %v3951_v9  ;;  %v1443_v45 = vmul.f32 %v3958_v28, %v3914_v13  ;;  %vm1439_vm3 = vweird.f32 %v3906_v40 }
 0x1ab   : > { %v996_v61 = vpop.f32.mrf.mxu2  ;;  %v820_v24 = vpop.f32.mrf.mxu0  ;;  %v2413_v44 = vmul.f32 %v2381_v54, %v3484_v0  ;;  %v1764_v12 = vsel %vm1763_vm7, %v3840_v52, %v1762_v57  ;;  %v2119_v38 = vmul.f32 0.5, %v2118_v46  ;;  %vm1438_vm5 = vweird.f32 %v3862_v3 }
 0x1ac   : > { %v3960_v11 = vsel %vm1765_vm8, %v1766_v1, %v1764_v12  ;;  %v821_v22 = vadd.f32 %v3873_v37, %v820_v24  ;;  %v1774_v0 = vmul.f32 %v3956_v53, %v3862_v3  ;;  %v909_v19 = vpop.f32.mrf.mxu1  ;;  %v997_v43 = vadd.f32 %v996_v61, %v908_v20  ;;  %vm4091_vm14 = vmor %vm1438_vm5, %vm1439_vm3 }
 0x1ad   : > { %v1225_v58 = vpop.f32.mrf.mxu3  ;;  %2445 = vst.msk [vmem:[%s3712_s13 + $0x28] sm:$0xff] %vm1078_vm0, %v2413_v44  ;;  %3024 = vrsqrt.f32 %v3960_v11  ;;  %v2120_v23 = vsub.f32 1.5, %v2119_v38  ;;  %v1444_v41 = vmul.f32 %v3958_v28, %v1443_v45  ;;  %vm1787_vm6 = vcmp.eq.f32.partialorder %v3914_v13, inf }
 0x1ae   : > { %2864 = vmatmul.msk.f32.gmra.mxu3 %vm1078_vm0, %v1065_v47  ;;  %v1776_v26 = vsel %vm1775_vm10, %v3862_v3, %v1774_v0  ;;  %v910_v62 = vadd.f32 %v909_v19, %v821_v22  ;;  %v3990_v10 = vmax.f32 %v997_v43, 0.0  ;;  %v1299_v54 = vmul.f32 2e-05, %v1225_v58 }
 0x1af   : > { %v2121_v4 = vmul.f32 %v3929_v50, %v2120_v23  ;;  %v3986_v17 = vsel %vm1777_vm13, %v1778_v14, %v1776_v26  ;;  %v1445_v46 = vmul.f32 0.5, %v1444_v41  ;;  %vm1789_vm7 = vcmp.eq.f32.partialorder %v3914_v13, 0.0 }
 0x1b0   : > { %3026 = vrsqrt.f32 %v3986_v17  ;;  %v3992_v35 = vpop.eup %3022  ;;  %v1066_v20 = vmul.f32 %v3990_v10, %v3990_v10  ;;  %v1790_v26 = vand.u32 2147483648, %v3914_v13  ;;  %v1431_v49 = vsel %vm4031_vm4, %v3891_v33, %v3934_v59 }
 0x1b1   : > { %v2125_v61 = vsel %vm2124_vm15, %v3929_v50, %v2121_v4  ;;  %v1453_v12 = vmul.f32 %v3992_v35, %v3951_v9  ;;  %v1446_v5 = vsub.f32 1.5, %v1445_v46  ;;  %v4009_v50 = vadd.f32 2.0, %v1299_v54 }
 0x1b2   : > { %v2382_v44 = vmul.f32 %v2125_v61, %v1421_v32  ;;  %vm2132_vm8 = vweird.f32 %v3960_v11  ;;  %vm1799_vm10 = vcmp.eq.f32.partialorder %v3951_v9, inf  ;;  %vm1801_vm11 = vcmp.eq.f32.partialorder %v3951_v9, 0.0 }
 0x1b3   : > { %v998_v57 = vpop.f32.mrf.mxu2  ;;  %v823_v47 = vpop.f32.mrf.mxu0  ;;  %v1454_v22 = vmul.f32 %v3992_v35, %v1453_v12  ;;  %v4018_v14 = vmul.f32 %v3958_v28, %v1446_v5  ;;  %3028 = vrsqrt.f32 %v4009_v50  ;;  %vm2142_vm15 = vweird.f32 %v3986_v17 }
 0x1b4   : > { %v999_v1 = vadd.f32 %v998_v57, %v910_v62  ;;  %v3999_v24 = vpop.eup %3024  ;;  %v2414_v38 = vmul.f32 %v2382_v44, %v3489_v7  ;;  %v824_v45 = vadd.f32 %v3873_v37, %v823_v47  ;;  %v912_v41 = vpop.f32.mrf.mxu1  ;;  %v1441_v3 = vsel %vm4091_vm14, %v3906_v40, %v3956_v53 }
 0x1b5   : > { %v1228_v58 = vpop.f32.mrf.mxu3  ;;  %v2127_v48 = vmul.f32 %v3999_v24, %v3960_v11  ;;  %v1455_v43 = vmul.f32 0.5, %v1454_v22  ;;  %vm2133_vm9 = vweird.f32 %v3999_v24  ;;  %v1786_v62 = vmul.f32 %v4018_v14, %v3914_v13 }
 0x1b6   : > { %v4014_v0 = vmax.f32 %v999_v1, 0.0  ;;  %2865 = vmatmul.msk.f32.gmra.mxu3 %vm1078_vm0, %v1066_v20  ;;  %v4023_v19 = vpop.eup %3026  ;;  %2446 = vst.msk [vmem:[%s3712_s13 + $0x30] sm:$0xff] %vm1078_vm0, %v2414_v38  ;;  %v913_v59 = vadd.f32 %v912_v41, %v824_v45  ;;  %v1300_v46 = vmul.f32 2e-05, %v1228_v58  ;;  %vm2134_vm12 = vmor %vm2132_vm8, %vm2133_vm9  ;;  %vm1448_vm2 = vweird.f32 %v3914_v13 }
 0x1b7   : > { %v2128_v23 = vmul.f32 %v3999_v24, %v2127_v48  ;;  %v2137_v52 = vmul.f32 %v4023_v19, %v3986_v17  ;;  %v1456_v54 = vsub.f32 1.5, %v1455_v43  ;;  %v1788_v1 = vsel %vm1787_vm6, %v3914_v13, %v1786_v62 }
 0x1b8   : > { %v1067_v57 = vmul.f32 %v4014_v0, %v4014_v0  ;;  %v4065_v58 = vsel %vm1789_vm7, %v1790_v26, %v1788_v1  ;;  %v4067_v5 = vadd.f32 2.0, %v1300_v46  ;;  %vm2143_vm13 = vweird.f32 %v4023_v19 }
 0x1b9   : > { %v2129_v4 = vmul.f32 0.5, %v2128_v23  ;;  %v2138_v33 = vmul.f32 %v4023_v19, %v2137_v52  ;;  %v4056_v47 = vmul.f32 %v3992_v35, %v1456_v54  ;;  %v4060_v12 = vpop.eup %3028  ;;  %3030 = vrsqrt.f32 %v4065_v58  ;;  %vm2144_vm1 = vmor %vm2142_vm15, %vm2143_vm13 }
 0x1ba   : > { %v1802_v23 = vand.u32 2147483648, %v3951_v9  ;;  %v1463_v26 = vmul.f32 %v4060_v12, %v4009_v50  ;;  %3032 = vrsqrt.f32 %v4067_v5  ;;  %vm1449_vm3 = vweird.f32 %v3958_v28 }
 0x1bb   : > { %v1001_v32 = vpop.f32.mrf.mxu2  ;;  %v2130_v61 = vsub.f32 1.5, %v2129_v4  ;;  %v2139_v48 = vmul.f32 0.5, %v2138_v33  ;;  %v825_v38 = vpop.f32.mrf.mxu0  ;;  %v1798_v22 = vmul.f32 %v4056_v47, %v3951_v9  ;;  %vm1811_vm4 = vcmp.eq.f32.partialorder %v4009_v50, inf  ;;  %vm4153_vm8 = vmor %vm1448_vm2, %vm1449_vm3 }
 0x1bc   : > { %v1002_v43 = vadd.f32 %v1001_v32, %v913_v59  ;;  %v826_v52 = vadd.f32 %v3873_v37, %v825_v38  ;;  %v1464_v62 = vmul.f32 %v4060_v12, %v1463_v26  ;;  %v914_v32 = vpop.f32.mrf.mxu1  ;;  %vm1813_vm5 = vcmp.eq.f32.partialorder %v4009_v50, 0.0 }
 0x1bd   : > { %v1231_v44 = vpop.f32.mrf.mxu3  ;;  %v2131_v20 = vmul.f32 %v3999_v24, %v2130_v61  ;;  %v2140_v7 = vsub.f32 1.5, %v2139_v48  ;;  %v1800_v4 = vsel %vm1799_vm10, %v3951_v9, %v1798_v22  ;;  %vm2152_vm7 = vweird.f32 %v4065_v58 }
 0x1be   : > { %2866 = vmatmul.msk.f32.gmra.mxu3 %vm1078_vm0, %v1067_v57  ;;  %v1465_v54 = vmul.f32 0.5, %v1464_v62  ;;  %v4111_v57 = vmax.f32 %v1002_v43, 0.0  ;;  %v915_v59 = vadd.f32 %v914_v32, %v826_v52  ;;  %v1301_v46 = vmul.f32 2e-05, %v1231_v44 }
 0x1bf   : > { %v2135_v45 = vsel %vm2134_vm12, %v3999_v24, %v2131_v20  ;;  %v2141_v41 = vmul.f32 %v4023_v19, %v2140_v7  ;;  %v3031_v33 = vpop.eup %3030  ;;  %vm1459_vm10 = vweird.f32 %v3992_v35  ;;  %vm1458_vm12 = vweird.f32 %v3951_v9 }
 0x1c0   : > { %v2383_v11 = vmul.f32 %v2135_v45, %v1431_v49  ;;  %v4099_v49 = vsel %vm1801_vm11, %v1802_v23, %v1800_v4  ;;  %v2147_v20 = vmul.f32 %v3031_v33, %v4065_v58  ;;  %v1466_v48 = vsub.f32 1.5, %v1465_v54  ;;  %v4118_v53 = vpop.eup %3032  ;;  %vm4178_vm13 = vmor %vm1458_vm12, %vm1459_vm10 }
 0x1c1   : > { %3034 = vrsqrt.f32 %v4099_v49  ;;  %v2145_v17 = vsel %vm2144_vm1, %v4023_v19, %v2141_v41  ;;  %v1068_v40 = vmul.f32 %v4111_v57, %v4111_v57  ;;  %v4121_v38 = vadd.f32 2.0, %v1301_v46 }
 0x1c2   : > { %v2415_v37 = vmul.f32 %v2383_v11, %v3502_v27  ;;  %v2384_v27 = vmul.f32 %v2145_v17, %v1441_v3  ;;  %v2148_v23 = vmul.f32 %v3031_v33, %v2147_v20  ;;  %v4124_v45 = vmul.f32 %v4060_v12, %v1466_v48 }
 0x1c3   : > { %v1003_v61 = vpop.f32.mrf.mxu2  ;;  %v1473_v44 = vmul.f32 %v4118_v53, %v4067_v5  ;;  %3036 = vrsqrt.f32 %v4121_v38  ;;  %v1814_v4 = vand.u32 2147483648, %v4009_v50  ;;  %vm2153_vm6 = vweird.f32 %v3031_v33 }
 0x1c4   : > { %2447 = vst.msk [vmem:[%s3712_s13 + $0x38] sm:$0xff] %vm1078_vm0, %v2415_v37  ;;  %v2416_v19 = vmul.f32 %v2384_v27, %v3507_v34  ;;  %v1004_v22 = vadd.f32 %v1003_v61, %v915_v59  ;;  %v2149_v34 = vmul.f32 0.5, %v2148_v23  ;;  %v1810_v11 = vmul.f32 %v4124_v45, %v4009_v50  ;;  %vm2154_vm9 = vmor %vm2152_vm7, %vm2153_vm6 }
 0x1c5   : > { %v1234_v1 = vpop.f32.mrf.mxu3  ;;  %v1474_v52 = vmul.f32 %v4118_v53, %v1473_v44  ;;  %vm2162_vm14 = vweird.f32 %v4099_v49  ;;  %v1461_v9 = vsel %vm4178_vm13, %v3992_v35, %v4056_v47  ;;  %vm1823_vm1 = vcmp.eq.f32.partialorder %v4067_v5, inf }
 0x1c6   : > { %2867 = vmatmul.msk.f32.gmra.mxu3 %vm1078_vm0, %v1068_v40  ;;  %v1302_v7 = vmul.f32 2e-05, %v1234_v1  ;;  %2448 = vst.msk [vmem:[%s3712_s13 + $0x40] sm:$0xff] %vm1078_vm0, %v2416_v19  ;;  %v4141_v24 = vmax.f32 %v1004_v22, 0.0  ;;  %v2150_v41 = vsub.f32 1.5, %v2149_v34  ;;  %v1812_v3 = vsel %vm1811_vm4, %v4009_v50, %v1810_v11 }
 0x1c7   : > { %v3035_v26 = vpop.eup %3034  ;;  %v1475_v17 = vmul.f32 0.5, %v1474_v52  ;;  %v4159_v58 = vsel %vm1813_vm5, %v1814_v4, %v1812_v3  ;;  %v1451_v1 = vsel %vm4153_vm8, %v3958_v28, %v4018_v14  ;;  %vm1825_vm2 = vcmp.eq.f32.partialorder %v4067_v5, 0.0 }
 0x1c8   : > { %v2157_v43 = vmul.f32 %v3035_v26, %v4099_v49  ;;  %v4143_v37 = vadd.f32 2.0, %v1302_v7  ;;  %v1069_v54 = vmul.f32 %v4141_v24, %v4141_v24  ;;  %v2151_v27 = vmul.f32 %v3031_v33, %v2150_v41 }
 0x1c9   : > { %v4162_v46 = vpop.eup %3036  ;;  %v1476_v13 = vsub.f32 1.5, %v1475_v17  ;;  %vm2163_vm11 = vweird.f32 %v3035_v26  ;;  %v1826_v49 = vand.u32 2147483648, %v4067_v5  ;;  %vm1469_vm3 = vweird.f32 %v4060_v12 }
 0x1ca   : > { %v2158_v62 = vmul.f32 %v3035_v26, %v2157_v43  ;;  %3038 = vrsqrt.f32 %v4143_v37  ;;  %v2155_v20 = vsel %vm2154_vm9, %v3031_v33, %v2151_v27  ;;  %v1483_v40 = vmul.f32 %v4162_v46, %v4121_v38  ;;  %vm2164_vm15 = vmor %vm2162_vm14, %vm2163_vm11 }
 0x1cb   : > { %3040 = vrsqrt.f32 %v4159_v58  ;;  %v2385_v19 = vmul.f32 %v2155_v20, %v1451_v1  ;;  %v4176_v28 = vmul.f32 %v4118_v53, %v1476_v13  ;;  %vm1835_vm4 = vcmp.eq.f32.partialorder %v4121_v38, inf }
 0x1cc   : > { %v2159_v59 = vmul.f32 0.5, %v2158_v62  ;;  %v1484_v33 = vmul.f32 %v4162_v46, %v1483_v40  ;;  %vm1837_vm5 = vcmp.eq.f32.partialorder %v4121_v38, 0.0  ;;  %v1838_v13 = vand.u32 2147483648, %v4121_v38 }
 0x1cd   : > { %v1237_v32 = vpop.f32.mrf.mxu3  ;;  %v2417_v44 = vmul.f32 %v2385_v19, %v3520_v55  ;;  %v1822_v7 = vmul.f32 %v4176_v28, %v4067_v5  ;;  %vm1468_vm7 = vweird.f32 %v4009_v50  ;;  %vm2172_vm9 = vweird.f32 %v4159_v58 }
 0x1ce   : > { %v2160_v48 = vsub.f32 1.5, %v2159_v59  ;;  %2868 = vmatmul.msk.f32.gmra.mxu3 %vm1078_vm0, %v1069_v54  ;;  %v1303_v23 = vmul.f32 2e-05, %v1237_v32  ;;  %v1485_v11 = vmul.f32 0.5, %v1484_v33  ;;  %vm1470_vm8 = vmor %vm1468_vm7, %vm1469_vm3  ;;  %vm1847_vm11 = vcmp.eq.f32.partialorder %v4143_v37, inf }
 0x1cf   : > { %2449 = vst.msk [vmem:[%s3712_s13 + $0x48] sm:$0xff] %vm1078_vm0, %v2417_v44  ;;  %v1824_v35 = vsel %vm1823_vm1, %v4067_v5, %v1822_v7  ;;  %v1471_v50 = vsel %vm1470_vm8, %v4060_v12, %v4124_v45  ;;  %vm1849_vm12 = vcmp.eq.f32.partialorder %v4143_v37, 0.0  ;;  %vm1479_vm13 = vweird.f32 %v4118_v53 }
 0x1d0   : > { %v2161_v22 = vmul.f32 %v3035_v26, %v2160_v48  ;;  %v4192_v34 = vpop.eup %3038  ;;  %v4195_v4 = vadd.f32 2.0, %v1303_v23  ;;  %v4204_v62 = vsel %vm1825_vm2, %v1826_v49, %v1824_v35  ;;  %v1486_v3 = vsub.f32 1.5, %v1485_v11 }
 0x1d1   : > { %v3041_v55 = vpop.eup %3040  ;;  %v1493_v47 = vmul.f32 %v4192_v34, %v4143_v37  ;;  %3042 = vrsqrt.f32 %v4204_v62  ;;  %vm2182_vm2 = vweird.f32 %v4204_v62  ;;  %vm1488_vm3 = vweird.f32 %v4121_v38 }
 0x1d2   : > { %v2165_v43 = vsel %vm2164_vm15, %v3035_v26, %v2161_v22  ;;  %v2167_v26 = vmul.f32 %v3041_v55, %v4159_v58  ;;  %v4210_v61 = vmul.f32 %v4162_v46, %v1486_v3  ;;  %3044 = vrsqrt.f32 %v4195_v4 }
 0x1d3   : > { %v2386_v52 = vmul.f32 %v2165_v43, %v1461_v9  ;;  %v1494_v54 = vmul.f32 %v4192_v34, %v1493_v47  ;;  %vm2173_vm6 = vweird.f32 %v3041_v55  ;;  %v1850_v58 = vand.u32 2147483648, %v4143_v37 }
 0x1d4   : > { %v2168_v32 = vmul.f32 %v3041_v55, %v2167_v26  ;;  %v1834_v1 = vmul.f32 %v4210_v61, %v4121_v38  ;;  %vm2174_vm10 = vmor %vm2172_vm9, %vm2173_vm6  ;;  %vm1478_vm15 = vweird.f32 %v4067_v5  ;;  %vm1859_vm6 = vcmp.eq.f32.partialorder %v4195_v4, inf }
 0x1d5   : > { %v1240_v41 = vpop.f32.mrf.mxu3  ;;  %v2418_v17 = vmul.f32 %v2386_v52, %v3525_v63  ;;  %v1495_v27 = vmul.f32 0.5, %v1494_v54  ;;  %vm1480_vm1 = vmor %vm1478_vm15, %vm1479_vm13  ;;  %vm1861_vm7 = vcmp.eq.f32.partialorder %v4195_v4, 0.0  ;;  %vm1498_vm13 = vweird.f32 %v4143_v37 }
 0x1d6   : > { %v2169_v59 = vmul.f32 0.5, %v2168_v32  ;;  %v1304_v63 = vmul.f32 2e-05, %v1240_v41  ;;  %v1836_v40 = vsel %vm1835_vm4, %v4121_v38, %v1834_v1 }
 0x1d7   : > { %2450 = vst.msk [vmem:[%s3712_s13 + $0x50] sm:$0xff] %vm1078_vm0, %v2418_v17  ;;  %v1496_v20 = vsub.f32 1.5, %v1495_v27  ;;  %v3043_v14 = vpop.eup %3042  ;;  %v4225_v22 = vsel %vm1837_vm5, %v1838_v13, %v1836_v40  ;;  %vm1489_vm5 = vweird.f32 %v4162_v46 }
 0x1d8   : > { %v2170_v48 = vsub.f32 1.5, %v2169_v59  ;;  %v4222_v19 = vadd.f32 2.0, %v1304_v63  ;;  %v4230_v44 = vpop.eup %3044  ;;  %v2177_v7 = vmul.f32 %v3043_v14, %v4204_v62  ;;  %3046 = vrsqrt.f32 %v4225_v22  ;;  %vm1490_vm9 = vmor %vm1488_vm3, %vm1489_vm5 }
 0x1d9   : > { %v4228_v33 = vmul.f32 %v4192_v34, %v1496_v20  ;;  %v1503_v49 = vmul.f32 %v4230_v44, %v4195_v4  ;;  %vm2183_vm14 = vweird.f32 %v3043_v14  ;;  %vm1509_vm5 = vweird.f32 %v4230_v44 }
 0x1da   : > { %v2171_v9 = vmul.f32 %v3041_v55, %v2170_v48  ;;  %v2178_v52 = vmul.f32 %v3043_v14, %v2177_v7  ;;  %3048 = vrsqrt.f32 %v4222_v19  ;;  %vm2184_vm4 = vmor %vm2182_vm2, %vm2183_vm14  ;;  %v1481_v48 = vsel %vm1480_vm1, %v4118_v53, %v4176_v28 }
 0x1db   : > { %v1846_v43 = vmul.f32 %v4228_v33, %v4143_v37  ;;  %v1504_v45 = vmul.f32 %v4230_v44, %v1503_v49  ;;  %v1862_v49 = vand.u32 2147483648, %v4195_v4  ;;  %vm1871_vm3 = vcmp.eq.f32.partialorder %v4222_v19, inf }
 0x1dc   : > { %v2175_v11 = vsel %vm2174_vm10, %v3041_v55, %v2171_v9  ;;  %v2179_v47 = vmul.f32 0.5, %v2178_v52  ;;  %vm2192_vm10 = vweird.f32 %v4225_v22 }
 0x1dd   : > { %v1243_v23 = vpop.f32.mrf.mxu3  ;;  %v2387_v35 = vmul.f32 %v2175_v11, %v1471_v50  ;;  %v1848_v12 = vsel %vm1847_vm11, %v4143_v37, %v1846_v43  ;;  %v1505_v55 = vmul.f32 0.5, %v1504_v45  ;;  %vm1499_vm11 = vweird.f32 %v4192_v34 }
 0x1de   : > { %v4250_v41 = vsel %vm1849_vm12, %v1850_v58, %v1848_v12  ;;  %v3047_v3 = vpop.eup %3046  ;;  %v2180_v17 = vsub.f32 1.5, %v2179_v47  ;;  %v1305_v54 = vmul.f32 2e-05, %v1243_v23  ;;  %vm4304_vm14 = vmor %vm1498_vm13, %vm1499_vm11 }
 0x1df   : > { %v2419_v26 = vmul.f32 %v2387_v35, %v3538_v21  ;;  %3050 = vrsqrt.f32 %v4250_v41  ;;  %v2187_v32 = vmul.f32 %v3047_v3, %v4225_v22  ;;  %v1506_v27 = vsub.f32 1.5, %v1505_v55 }
 0x1e0   : > { %v4259_v1 = vpop.eup %3048  ;;  %v2181_v21 = vmul.f32 %v3043_v14, %v2180_v17  ;;  %v4263_v63 = vadd.f32 2.0, %v1305_v54  ;;  %vm2193_vm8 = vweird.f32 %v3047_v3  ;;  %v1491_v17 = vsel %vm1490_vm9, %v4162_v46, %v4210_v61 }
 0x1e1   : > { %2451 = vst.msk [vmem:[%s3712_s13 + $0x58] sm:$0xff] %vm1078_vm0, %v2419_v26  ;;  %v2188_v13 = vmul.f32 %v3047_v3, %v2187_v32  ;;  %v4267_v5 = vmul.f32 %v4230_v44, %v1506_v27  ;;  %v1513_v20 = vmul.f32 %v4259_v1, %v4222_v19  ;;  %vm2194_vm12 = vmor %vm2192_vm10, %vm2193_vm8  ;;  %v1501_v46 = vsel %vm4304_vm14, %v4192_v34, %v4228_v33 }
 0x1e2   : > { %v2185_v40 = vsel %vm2184_vm4, %v3043_v14, %v2181_v21  ;;  %3052 = vrsqrt.f32 %v4263_v63  ;;  %vm2202_vm1 = vweird.f32 %v4250_v41  ;;  %vm1873_vm4 = vcmp.eq.f32.partialorder %v4222_v19, 0.0 }
 0x1e3   : > { %v2388_v9 = vmul.f32 %v2185_v40, %v1481_v48  ;;  %v2189_v7 = vmul.f32 0.5, %v2188_v13  ;;  %v1858_v50 = vmul.f32 %v4267_v5, %v4195_v4  ;;  %v1514_v53 = vmul.f32 %v4259_v1, %v1513_v20 }
 0x1e4   : > { %v1874_v48 = vand.u32 2147483648, %v4222_v19  ;;  %vm1508_vm8 = vweird.f32 %v4195_v4  ;;  %vm1885_vm9 = vcmp.eq.f32.partialorder %v4263_v63, 0.0  ;;  %vm1519_vm13 = vweird.f32 %v4259_v1 }
 0x1e5   : > { %v1246_v59 = vpop.f32.mrf.mxu3  ;;  %v3051_v23 = vpop.eup %3050  ;;  %v2420_v28 = vmul.f32 %v2388_v9, %v3543_v29  ;;  %v2190_v14 = vsub.f32 1.5, %v2189_v7  ;;  %v1860_v11 = vsel %vm1859_vm6, %v4195_v4, %v1858_v50  ;;  %v1515_v35 = vmul.f32 0.5, %v1514_v53  ;;  %vm1510_vm10 = vmor %vm1508_vm8, %vm1509_vm5 }
 0x1e6   : > { %v1306_v62 = vmul.f32 2e-05, %v1246_v59  ;;  %v2197_v43 = vmul.f32 %v3051_v23, %v4250_v41  ;;  %v4283_v58 = vsel %vm1861_vm7, %v1862_v49, %v1860_v11  ;;  %vm2203_vm15 = vweird.f32 %v3051_v23 }
 0x1e7   : > { %2452 = vst.msk [vmem:[%s3712_s13 + $0x60] sm:$0xff] %vm1078_vm0, %v2420_v28  ;;  %v2191_v45 = vmul.f32 %v3047_v3, %v2190_v14  ;;  %3054 = vrsqrt.f32 %v4283_v58  ;;  %v1516_v55 = vsub.f32 1.5, %v1515_v35  ;;  %vm2204_vm2 = vmor %vm2202_vm1, %vm2203_vm15  ;;  %vm1883_vm6 = vcmp.eq.f32.partialorder %v4263_v63, inf }
 0x1e8   : > { %v2198_v52 = vmul.f32 %v3051_v23, %v2197_v43  ;;  %v4285_v12 = vadd.f32 2.0, %v1306_v62  ;;  %v4296_v47 = vpop.eup %3052  ;;  %vm2212_vm11 = vweird.f32 %v4283_v58  ;;  %v1511_v4 = vsel %vm1510_vm10, %v4230_v44, %v4267_v5 }
 0x1e9   : > { %v2195_v38 = vsel %vm2194_vm12, %v3047_v3, %v2191_v45  ;;  %v1523_v22 = vmul.f32 %v4296_v47, %v4263_v63  ;;  %v4309_v59 = vmul.f32 %v4259_v1, %v1516_v55 }
 0x1ea   : > { %v2199_v26 = vmul.f32 0.5, %v2198_v52  ;;  %3056 = vrsqrt.f32 %v4285_v12  ;;  %v2389_v54 = vmul.f32 %v2195_v38, %v1491_v17  ;;  %vm1895_vm14 = vcmp.eq.f32.partialorder %v4285_v12, inf }
 0x1eb   : > { %v1524_v37 = vmul.f32 %v4296_v47, %v1523_v22  ;;  %v1870_v13 = vmul.f32 %v4309_v59, %v4222_v19  ;;  %vm1897_vm15 = vcmp.eq.f32.partialorder %v4285_v12, 0.0 }
 0x1ec   : > { %v2200_v27 = vsub.f32 1.5, %v2199_v26  ;;  %v2421_v3 = vmul.f32 %v2389_v54, %v3556_v51 }
 0x1ed   : > { %v1249_v29 = vpop.f32.mrf.mxu3  ;;  %v3055_v20 = vpop.eup %3054  ;;  %v1525_v40 = vmul.f32 0.5, %v1524_v37  ;;  %v1872_v41 = vsel %vm1871_vm3, %v4222_v19, %v1870_v13 }
 0x1ee   : > { %v1307_v61 = vmul.f32 2e-05, %v1249_v29  ;;  %v2201_v21 = vmul.f32 %v3051_v23, %v2200_v27  ;;  %2453 = vst.msk [vmem:[%s3712_s13 + $0x68] sm:$0xff] %vm1078_vm0, %v2421_v3  ;;  %v2207_v33 = vmul.f32 %v3055_v20, %v4283_v58  ;;  %v4331_v7 = vsel %vm1873_vm4, %v1874_v48, %v1872_v41 }
 0x1ef   : > { %v1526_v50 = vsub.f32 1.5, %v1525_v40  ;;  %3058 = vrsqrt.f32 %v4331_v7  ;;  %vm2213_vm7 = vweird.f32 %v3055_v20  ;;  %v1898_v48 = vand.u32 2147483648, %v4285_v12 }
 0x1f0   : > { %v4322_v62 = vadd.f32 2.0, %v1307_v61  ;;  %v4324_v34 = vpop.eup %3056  ;;  %v2205_v51 = vsel %vm2204_vm2, %v3051_v23, %v2201_v21  ;;  %v2208_v53 = vmul.f32 %v3055_v20, %v2207_v33  ;;  %vm2214_vm12 = vmor %vm2212_vm11, %vm2213_vm7  ;;  %vm1518_vm2 = vweird.f32 %v4222_v19 }
 0x1f1   : > { %v2390_v9 = vmul.f32 %v2205_v51, %v1501_v46  ;;  %v1533_v43 = vmul.f32 %v4324_v34, %v4285_v12  ;;  %v4338_v28 = vmul.f32 %v4296_v47, %v1526_v50  ;;  %vm1520_vm3 = vmor %vm1518_vm2, %vm1519_vm13  ;;  %vm2222_vm4 = vweird.f32 %v4331_v7 }
 0x1f2   : > { %3060 = vrsqrt.f32 %v4322_v62  ;;  %v2209_v11 = vmul.f32 0.5, %v2208_v53  ;;  %vm1529_vm7 = vweird.f32 %v4296_v47  ;;  %vm1909_vm11 = vcmp.eq.f32.partialorder %v4322_v62, 0.0 }
 0x1f3   : > { %v2422_v23 = vmul.f32 %v2390_v9, %v3561_v60  ;;  %v1534_v14 = vmul.f32 %v4324_v34, %v1533_v43  ;;  %v1882_v52 = vmul.f32 %v4338_v28, %v4263_v63  ;;  %v1886_v60 = vand.u32 2147483648, %v4263_v63 }
 0x1f4   : > { %v2210_v45 = vsub.f32 1.5, %v2209_v11  ;;  %v1521_v11 = vsel %vm1520_vm3, %v4259_v1, %v4309_v59  ;;  %v1910_v1 = vand.u32 2147483648, %v4322_v62 }
 0x1f5   : > { %v1252_v49 = vpop.f32.mrf.mxu3  ;;  %2454 = vst.msk [vmem:[%s3712_s13 + $0x70] sm:$0xff] %vm1078_vm0, %v2422_v23  ;;  %v1535_v35 = vmul.f32 0.5, %v1534_v14  ;;  %v1884_v26 = vsel %vm1883_vm6, %v4263_v63, %v1882_v52  ;;  %v3059_v17 = vpop.eup %3058  ;;  %vm1528_vm6 = vweird.f32 %v4263_v63 }
 0x1f6   : > { %v1308_v29 = vmul.f32 2e-05, %v1252_v49  ;;  %v2211_v38 = vmul.f32 %v3055_v20, %v2210_v45  ;;  %v4353_v22 = vsel %vm1885_vm9, %v1886_v60, %v1884_v26  ;;  %v2217_v27 = vmul.f32 %v3059_v17, %v4331_v7 }
 0x1f7   : > { %v1536_v55 = vsub.f32 1.5, %v1535_v35  ;;  %3062 = vrsqrt.f32 %v4353_v22  ;;  %vm2223_vm1 = vweird.f32 %v3059_v17  ;;  %vm1907_vm9 = vcmp.eq.f32.partialorder %v4322_v62, inf }
 0x1f8   : > { %v4355_v54 = vadd.f32 2.0, %v1308_v29  ;;  %v4357_v32 = vpop.eup %3060  ;;  %v2215_v46 = vsel %vm2214_vm12, %v3055_v20, %v2211_v38  ;;  %v2218_v3 = vmul.f32 %v3059_v17, %v2217_v27  ;;  %vm2224_vm5 = vmor %vm2222_vm4, %vm2223_vm1  ;;  %vm2232_vm10 = vweird.f32 %v4353_v22 }
 0x1f9   : > { %v4364_v37 = vmul.f32 %v4324_v34, %v1536_v55  ;;  %v1543_v58 = vmul.f32 %v4357_v32, %v4322_v62  ;;  %v2391_v61 = vmul.f32 %v2215_v46, %v1511_v4  ;;  %vm1530_vm12 = vmor %vm1528_vm6, %vm1529_vm7  ;;  %vm1548_vm7 = vweird.f32 %v4322_v62 }
 0x1fa   : > { %3064 = vrsqrt.f32 %v4355_v54  ;;  %v2219_v20 = vmul.f32 0.5, %v2218_v3  ;;  %vm1919_vm1 = vcmp.eq.f32.partialorder %v4355_v54, inf  ;;  %vm1921_vm3 = vcmp.eq.f32.partialorder %v4355_v54, 0.0 }
 0x1fb   : > { %v1894_v13 = vmul.f32 %v4364_v37, %v4285_v12  ;;  %v1544_v44 = vmul.f32 %v4357_v32, %v1543_v58  ;;  %v2423_v5 = vmul.f32 %v2391_v61, %v3568_v8 }
 0x1fc   : > { %v2220_v9 = vsub.f32 1.5, %v2219_v20 }
 0x1fd   : > { %v1255_v21 = vpop.f32.mrf.mxu3  ;;  %v1896_v40 = vsel %vm1895_vm14, %v4285_v12, %v1894_v13  ;;  %v1545_v51 = vmul.f32 0.5, %v1544_v44  ;;  %v3063_v41 = vpop.eup %3062  ;;  %2455 = vst.msk [vmem:[%s3712_s13 + $0x78] sm:$0xff] %vm1078_vm0, %v2423_v5  ;;  %v1531_v13 = vsel %vm1530_vm12, %v4296_v47, %v4338_v28  ;;  %vm1538_vm14 = vweird.f32 %v4285_v12 }
 0x1fe   : > { %v1309_v33 = vmul.f32 2e-05, %v1255_v21  ;;  %v4380_v50 = vsel %vm1897_vm15, %v1898_v48, %v1896_v40  ;;  %v2227_v8 = vmul.f32 %v3063_v41, %v4353_v22  ;;  %v2221_v49 = vmul.f32 %v3059_v17, %v2220_v9 }
 0x1ff   : > { %3066 = vrsqrt.f32 %v4380_v50  ;;  %v1546_v53 = vsub.f32 1.5, %v1545_v51  ;;  %vm2233_vm8 = vweird.f32 %v3063_v41  ;;  %vm1539_vm15 = vweird.f32 %v4324_v34 }
 0x200   : > { %v4385_v43 = vpop.eup %3064  ;;  %v4390_v23 = vadd.f32 2.0, %v1309_v33  ;;  %v2228_v14 = vmul.f32 %v3063_v41, %v2227_v8  ;;  %v2225_v52 = vsel %vm2224_vm5, %v3059_v17, %v2221_v49  ;;  %vm2234_vm13 = vmor %vm2232_vm10, %vm2233_vm8  ;;  %v1922_v33 = vand.u32 2147483648, %v4355_v54 }
 0x201   : > { %v1553_v19 = vmul.f32 %v4385_v43, %v4355_v54  ;;  %v4398_v35 = vmul.f32 %v4357_v32, %v1546_v53  ;;  %v2392_v7 = vmul.f32 %v2225_v52, %v1521_v11  ;;  %vm1540_vm4 = vmor %vm1538_vm14, %vm1539_vm15  ;;  %vm2242_vm5 = vweird.f32 %v4380_v50 }
 0x202   : > { %3068 = vrsqrt.f32 %v4390_v23  ;;  %v2229_v45 = vmul.f32 0.5, %v2228_v14  ;;  %v1541_v52 = vsel %vm1540_vm4, %v4324_v34, %v4364_v37  ;;  %vm1549_vm8 = vweird.f32 %v4357_v32 }
 0x203   : > { %v1554_v60 = vmul.f32 %v4385_v43, %v1553_v19  ;;  %v1906_v29 = vmul.f32 %v4398_v35, %v4322_v62  ;;  %v2424_v55 = vmul.f32 %v2392_v7, %v3573_v16  ;;  %vm1933_vm12 = vcmp.eq.f32.partialorder %v4390_v23, 0.0 }
 0x204   : > { %v2230_v17 = vsub.f32 1.5, %v2229_v45  ;;  %vm1559_vm15 = vweird.f32 %v4385_v43 }
 0x205   : > { %v3067_v26 = vpop.eup %3066  ;;  %v1555_v38 = vmul.f32 0.5, %v1554_v60  ;;  %v1908_v46 = vsel %vm1907_vm9, %v4322_v62, %v1906_v29  ;;  %2456 = vst.msk [vmem:[%s3712_s13 + $0x80] sm:$0xff] %vm1078_vm0, %v2424_v55  ;;  %vm1931_vm9 = vcmp.eq.f32.partialorder %v4390_v23, inf }
 0x206   : > { %v1258_v59 = vpop.f32.mrf.mxu3  ;;  %v2237_v4 = vmul.f32 %v3067_v26, %v4380_v50  ;;  %v2231_v58 = vmul.f32 %v3063_v41, %v2230_v17  ;;  %v4418_v16 = vsel %vm1909_vm11, %v1910_v1, %v1908_v46  ;;  %vm2243_vm2 = vweird.f32 %v3067_v26 }
 0x207   : > { %v1310_v27 = vmul.f32 2e-05, %v1258_v59  ;;  %v1556_v61 = vsub.f32 1.5, %v1555_v38  ;;  %3070 = vrsqrt.f32 %v4418_v16  ;;  %vm2244_vm6 = vmor %vm2242_vm5, %vm2243_vm2  ;;  %v1934_v38 = vand.u32 2147483648, %v4390_v23 }
 0x208   : > { %v4422_v22 = vpop.eup %3068  ;;  %v2238_v21 = vmul.f32 %v3067_v26, %v2237_v4  ;;  %v2235_v44 = vsel %vm2234_vm13, %v3063_v41, %v2231_v58  ;;  %vm2252_vm11 = vweird.f32 %v4418_v16  ;;  %vm1550_vm13 = vmor %vm1548_vm7, %vm1549_vm8  ;;  %vm1568_vm8 = vweird.f32 %v4390_v23 }
 0x209   : > { %v4420_v3 = vadd.f32 2.0, %v1310_v27  ;;  %v4429_v63 = vmul.f32 %v4385_v43, %v1556_v61  ;;  %v1563_v5 = vmul.f32 %v4422_v22, %v4390_v23  ;;  %v2393_v20 = vmul.f32 %v2235_v44, %v1531_v13 }
 0x20a   : > { %v2239_v48 = vmul.f32 0.5, %v2238_v21 }
 0x20b   : > { %3072 = vrsqrt.f32 %v4420_v3  ;;  %v1918_v40 = vmul.f32 %v4429_v63, %v4355_v54  ;;  %v1564_v47 = vmul.f32 %v4422_v22, %v1563_v5  ;;  %v2425_v28 = vmul.f32 %v2393_v20, %v3580_v30 }
 0x20c   : > { %v2240_v51 = vsub.f32 1.5, %v2239_v48  ;;  %vm1945_vm4 = vcmp.eq.f32.partialorder %v4420_v3, 0.0 }
 0x20d   : > { %v1920_v9 = vsel %vm1919_vm1, %v4355_v54, %v1918_v40  ;;  %v1565_v8 = vmul.f32 0.5, %v1564_v47  ;;  %v3071_v53 = vpop.eup %3070  ;;  %2457 = vst.msk [vmem:[%s3712_s13 + $0x88] sm:$0xff] %vm1078_vm0, %v2425_v28  ;;  %vm1943_vm1 = vcmp.eq.f32.partialorder %v4420_v3, inf }
 0x20e   : > { %v1261_v41 = vpop.f32.mrf.mxu3  ;;  %v2241_v30 = vmul.f32 %v3067_v26, %v2240_v51  ;;  %v4451_v14 = vsel %vm1921_vm3, %v1922_v33, %v1920_v9  ;;  %v2247_v19 = vmul.f32 %v3071_v53, %v4418_v16  ;;  %vm2253_vm10 = vweird.f32 %v3071_v53 }
 0x20f   : > { %v1311_v49 = vmul.f32 2e-05, %v1261_v41  ;;  %3074 = vrsqrt.f32 %v4451_v14  ;;  %v1566_v45 = vsub.f32 1.5, %v1565_v8  ;;  %vm2254_vm14 = vmor %vm2252_vm11, %vm2253_vm10  ;;  %v1551_v16 = vsel %vm1550_vm13, %v4357_v32, %v4398_v35 }
 0x210   : > { %v2245_v7 = vsel %vm2244_vm6, %v3067_v26, %v2241_v30  ;;  %v2248_v29 = vmul.f32 %v3071_v53, %v2247_v19  ;;  %v1946_v32 = vand.u32 2147483648, %v4420_v3  ;;  %vm1558_vm3 = vweird.f32 %v4355_v54 }
 0x211   : > { %v4455_v11 = vpop.eup %3072  ;;  %v4459_v12 = vadd.f32 2.0, %v1311_v49  ;;  %v2394_v60 = vmul.f32 %v2245_v7, %v1541_v52  ;;  %v4464_v1 = vmul.f32 %v4422_v22, %v1566_v45  ;;  %vm1560_vm5 = vmor %vm1558_vm3, %vm1559_vm15  ;;  %vm2262_vm6 = vweird.f32 %v4451_v14 }
 0x212   : > { %v1573_v50 = vmul.f32 %v4455_v11, %v4420_v3  ;;  %v2249_v55 = vmul.f32 0.5, %v2248_v29  ;;  %v1561_v19 = vsel %vm1560_vm5, %v4385_v43, %v4429_v63  ;;  %vm1578_vm3 = vweird.f32 %v4420_v3 }
 0x213   : > { %3076 = vrsqrt.f32 %v4459_v12  ;;  %v2426_v59 = vmul.f32 %v2394_v60, %v3588_v42  ;;  %v1930_v37 = vmul.f32 %v4464_v1, %v4390_v23  ;;  %vm1955_vm10 = vcmp.eq.f32.partialorder %v4459_v12, inf }
 0x214   : > { %v1574_v34 = vmul.f32 %v4455_v11, %v1573_v50  ;;  %v2250_v17 = vsub.f32 1.5, %v2249_v55  ;;  %vm1957_vm13 = vcmp.eq.f32.partialorder %v4459_v12, 0.0 }
 0x215   : > { %v3075_v26 = vpop.eup %3074  ;;  %2458 = vst.msk [vmem:[%s3712_s13 + $0x90] sm:$0xff] %vm1078_vm0, %v2426_v59  ;;  %v1932_v4 = vsel %vm1931_vm9, %v4390_v23, %v1930_v37  ;;  %vm1569_vm9 = vweird.f32 %v4422_v22 }
 0x216   : > { %v1575_v42 = vmul.f32 0.5, %v1574_v34  ;;  %v2257_v27 = vmul.f32 %v3075_v26, %v4451_v14  ;;  %v2251_v58 = vmul.f32 %v3071_v53, %v2250_v17  ;;  %v4483_v61 = vsel %vm1933_vm12, %v1934_v38, %v1932_v4 }
 0x217   : > { %3078 = vrsqrt.f32 %v4483_v61  ;;  %vm2263_vm2 = vweird.f32 %v3075_v26  ;;  %vm2272_vm12 = vweird.f32 %v4483_v61 }
 0x218   : > { %v1576_v21 = vsub.f32 1.5, %v1575_v42  ;;  %v2258_v5 = vmul.f32 %v3075_v26, %v2257_v27  ;;  %v2255_v20 = vsel %vm2254_vm14, %v3071_v53, %v2251_v58  ;;  %vm2264_vm7 = vmor %vm2262_vm6, %vm2263_vm2 }
 0x219   : > { %v1264_v46 = vpop.f32.mrf.mxu3  ;;  %v4485_v44 = vpop.eup %3076  ;;  %v2395_v40 = vmul.f32 %v2255_v20, %v1551_v16  ;;  %vm1570_vm14 = vmor %vm1568_vm8, %vm1569_vm9 }
 0x21a   : > { %v1312_v13 = vmul.f32 2e-05, %v1264_v46  ;;  %v4491_v48 = vmul.f32 %v4455_v11, %v1576_v21  ;;  %v1583_v62 = vmul.f32 %v4485_v44, %v4459_v12  ;;  %v2259_v47 = vmul.f32 0.5, %v2258_v5 }
 0x21b   : > { %v2427_v33 = vmul.f32 %v2395_v40, %v3603_v2  ;;  %vm1589_vm9 = vweird.f32 %v4485_v44 }
 0x21c   : > { %v4496_v28 = vadd.f32 2.0, %v1312_v13  ;;  %v1942_v51 = vmul.f32 %v4491_v48, %v4420_v3  ;;  %v1584_v35 = vmul.f32 %v4485_v44, %v1583_v62  ;;  %v2260_v41 = vsub.f32 1.5, %v2259_v47 }
 0x21d   : > { %v3079_v49 = vpop.eup %3078  ;;  %2459 = vst.msk [vmem:[%s3712_s13 + $0x98] sm:$0xff] %vm1078_vm0, %v2427_v33 }
 0x21e   : > { %3080 = vrsqrt.f32 %v4496_v28  ;;  %v1944_v9 = vsel %vm1943_vm1, %v4420_v3, %v1942_v51  ;;  %v1585_v8 = vmul.f32 0.5, %v1584_v35  ;;  %v2261_v53 = vmul.f32 %v3075_v26, %v2260_v41 }
 0x21f   : > { %v4513_v2 = vsel %vm1945_vm4, %v1946_v32, %v1944_v9  ;;  %v2267_v54 = vmul.f32 %v3079_v49, %v4483_v61  ;;  %vm2273_vm11 = vweird.f32 %v3079_v49  ;;  %v1571_v61 = vsel %vm1570_vm14, %v4422_v22, %v4464_v1 }
 0x220   : > { %3082 = vrsqrt.f32 %v4513_v2  ;;  %v2265_v52 = vsel %vm2264_vm7, %v3075_v26, %v2261_v53  ;;  %v1586_v7 = vsub.f32 1.5, %v1585_v8  ;;  %vm2274_vm15 = vmor %vm2272_vm12, %vm2273_vm11  ;;  %vm1579_vm1 = vweird.f32 %v4455_v11 }
 0x221   : > { %v1267_v30 = vpop.f32.mrf.mxu3  ;;  %v2396_v60 = vmul.f32 %v2265_v52, %v1561_v19  ;;  %v2268_v29 = vmul.f32 %v3079_v49, %v2267_v54  ;;  %vm4570_vm4 = vmor %vm1578_vm3, %vm1579_vm1  ;;  %vm2282_vm5 = vweird.f32 %v4513_v2  ;;  %vm1967_vm6 = vcmp.eq.f32.partialorder %v4496_v28, inf }
 0x222   : > { %v1313_v45 = vmul.f32 2e-05, %v1267_v30  ;;  %v4522_v14 = vmul.f32 %v4485_v44, %v1586_v7  ;;  %vm1969_vm8 = vcmp.eq.f32.partialorder %v4496_v28, 0.0  ;;  %v1581_v30 = vsel %vm4570_vm4, %v4455_v11, %v4491_v48 }
 0x223   : > { %v2428_v55 = vmul.f32 %v2396_v60, %v3627_v31  ;;  %v2269_v34 = vmul.f32 0.5, %v2268_v29  ;;  %v1958_v31 = vand.u32 2147483648, %v4459_v12  ;;  %vm1588_vm11 = vweird.f32 %v4459_v12 }
 0x224   : > { %v4519_v50 = vpop.eup %3080  ;;  %v4524_v59 = vadd.f32 2.0, %v1313_v45  ;;  %v1954_v63 = vmul.f32 %v4522_v14, %v4459_v12 }
 0x225   : > { %v1593_v43 = vmul.f32 %v4519_v50, %v4496_v28  ;;  %2460 = vst.msk [vmem:[%s3712_s13 + $0xa0] sm:$0xff] %vm1078_vm0, %v2428_v55  ;;  %v2270_v26 = vsub.f32 1.5, %v2269_v34  ;;  %vm1599_vm3 = vweird.f32 %v4519_v50 }
 0x226   : > { %3084 = vrsqrt.f32 %v4524_v59  ;;  %v3083_v37 = vpop.eup %3082  ;;  %v1956_v42 = vsel %vm1955_vm10, %v4459_v12, %v1954_v63  ;;  %vm1979_vm12 = vcmp.eq.f32.partialorder %v4524_v59, inf  ;;  %vm1981_vm1 = vcmp.eq.f32.partialorder %v4524_v59, 0.0 }
 0x227   : > { %v1594_v17 = vmul.f32 %v4519_v50, %v1593_v43  ;;  %v2277_v38 = vmul.f32 %v3083_v37, %v4513_v2  ;;  %v2271_v4 = vmul.f32 %v3079_v49, %v2270_v26  ;;  %v4547_v46 = vsel %vm1957_vm13, %v1958_v31, %v1956_v42  ;;  %vm1590_vm13 = vmor %vm1588_vm11, %vm1589_vm9 }
 0x228   : > { %3086 = vrsqrt.f32 %v4547_v46  ;;  %vm2283_vm2 = vweird.f32 %v3083_v37  ;;  %vm2292_vm14 = vweird.f32 %v4547_v46 }
 0x229   : > { %v1270_v27 = vpop.f32.mrf.mxu3  ;;  %v1595_v58 = vmul.f32 0.5, %v1594_v17  ;;  %v2278_v13 = vmul.f32 %v3083_v37, %v2277_v38  ;;  %v2275_v5 = vsel %vm2274_vm15, %v3079_v49, %v2271_v4  ;;  %vm2284_vm7 = vmor %vm2282_vm5, %vm2283_vm2  ;;  %v1982_v38 = vand.u32 2147483648, %v4524_v59 }
 0x22a   : > { %v1314_v21 = vmul.f32 2e-05, %v1270_v27  ;;  %v2397_v23 = vmul.f32 %v2275_v5, %v1571_v61  ;;  %vm1598_vm2 = vweird.f32 %v4496_v28 }
 0x22b   : > { %v1596_v16 = vsub.f32 1.5, %v1595_v58  ;;  %v2279_v40 = vmul.f32 0.5, %v2278_v13  ;;  %v1591_v58 = vsel %vm1590_vm13, %v4485_v44, %v4522_v14 }
 0x22c   : > { %v4552_v20 = vadd.f32 2.0, %v1314_v21  ;;  %v4554_v62 = vpop.eup %3084  ;;  %v2429_v22 = vmul.f32 %v2397_v23, %v3656_v6  ;;  %v1970_v6 = vand.u32 2147483648, %v4496_v28 }
 0x22d   : > { %v4558_v47 = vmul.f32 %v4519_v50, %v1596_v16  ;;  %v1603_v51 = vmul.f32 %v4554_v62, %v4524_v59  ;;  %v2280_v1 = vsub.f32 1.5, %v2279_v40  ;;  %vm1609_vm11 = vweird.f32 %v4554_v62 }
 0x22e   : > { %3088 = vrsqrt.f32 %v4552_v20  ;;  %v3087_v33 = vpop.eup %3086  ;;  %2461 = vst.msk [vmem:[%s3712_s13 + $0xa8] sm:$0xff] %vm1078_vm0, %v2429_v22  ;;  %vm1991_vm5 = vcmp.eq.f32.partialorder %v4552_v20, inf }
 0x22f   : > { %v1966_v32 = vmul.f32 %v4558_v47, %v4496_v28  ;;  %v1604_v35 = vmul.f32 %v4554_v62, %v1603_v51  ;;  %v2281_v9 = vmul.f32 %v3083_v37, %v2280_v1  ;;  %v2287_v8 = vmul.f32 %v3087_v33, %v4547_v46 }
 0x230   : > { %vm2293_vm10 = vweird.f32 %v3087_v33 }
 0x231   : > { %v1273_v3 = vpop.f32.mrf.mxu3  ;;  %v1968_v49 = vsel %vm1967_vm6, %v4496_v28, %v1966_v32  ;;  %v1605_v53 = vmul.f32 0.5, %v1604_v35  ;;  %v2285_v54 = vsel %vm2284_vm7, %v3083_v37, %v2281_v9  ;;  %v2288_v45 = vmul.f32 %v3087_v33, %v2287_v8  ;;  %vm2294_vm15 = vmor %vm2292_vm14, %vm2293_vm10 }
 0x232   : > { %v4584_v2 = vsel %vm1969_vm8, %v1970_v6, %v1968_v49  ;;  %v1315_v19 = vmul.f32 2e-05, %v1273_v3  ;;  %v2398_v7 = vmul.f32 %v2285_v54, %v1581_v30  ;;  %v1994_v32 = vand.u32 2147483648, %v4552_v20  ;;  %vm1600_vm7 = vmor %vm1598_vm2, %vm1599_vm3 }
 0x233   : > { %3090 = vrsqrt.f32 %v4584_v2  ;;  %v1606_v60 = vsub.f32 1.5, %v1605_v53  ;;  %v2289_v11 = vmul.f32 0.5, %v2288_v45  ;;  %vm1993_vm6 = vcmp.eq.f32.partialorder %v4552_v20, 0.0 }
 0x234   : > { %v4586_v52 = vpop.eup %3088  ;;  %v4591_v55 = vadd.f32 2.0, %v1315_v19  ;;  %v2430_v34 = vmul.f32 %v2398_v7, %v3705_v15  ;;  %vm2302_vm8 = vweird.f32 %v4584_v2  ;;  %v1601_v53 = vsel %vm1600_vm7, %v4519_v50, %v4558_v47 }
 0x235   : > { %v1613_v29 = vmul.f32 %v4586_v52, %v4552_v20  ;;  %v4596_v48 = vmul.f32 %v4554_v62, %v1606_v60  ;;  %v2290_v63 = vsub.f32 1.5, %v2289_v11  ;;  %vm1608_vm10 = vweird.f32 %v4524_v59 }
 0x236   : > { %3092 = vrsqrt.f32 %v4591_v55  ;;  %2462 = vst.msk [vmem:[%s3712_s13 + $0xb0] sm:$0xff] %vm1078_vm0, %v2430_v34  ;;  %vm2005_vm14 = vcmp.eq.f32.partialorder %v4591_v55, 0.0  ;;  %vm1619_vm3 = vweird.f32 %v4586_v52  ;;  %vm1618_vm7 = vweird.f32 %v4552_v20 }
 0x237   : > { %v1614_v43 = vmul.f32 %v4586_v52, %v1613_v29  ;;  %v1978_v37 = vmul.f32 %v4596_v48, %v4524_v59  ;;  %v2291_v17 = vmul.f32 %v3087_v33, %v2290_v63 }
 0x239   : > { %v1615_v15 = vmul.f32 0.5, %v1614_v43  ;;  %v1276_v26 = vpop.f32.mrf.mxu3  ;;  %v3091_v31 = vpop.eup %3090  ;;  %v1980_v12 = vsel %vm1979_vm12, %v4524_v59, %v1978_v37  ;;  %v2295_v21 = vsel %vm2294_vm15, %v3087_v33, %v2291_v17  ;;  %vm2003_vm12 = vcmp.eq.f32.partialorder %v4591_v55, inf  ;;  %vm1610_vm15 = vmor %vm1608_vm10, %vm1609_vm11 }
 0x23a   : > { %v1316_v42 = vmul.f32 2e-05, %v1276_v26  ;;  %v2297_v27 = vmul.f32 %v3091_v31, %v4584_v2  ;;  %v4613_v13 = vsel %vm1981_vm1, %v1982_v38, %v1980_v12  ;;  %v2399_v5 = vmul.f32 %v2295_v21, %v1591_v58 }
 0x23b   : > { %v1616_v4 = vsub.f32 1.5, %v1615_v15  ;;  %3094 = vrsqrt.f32 %v4613_v13  ;;  %vm2303_vm4 = vweird.f32 %v3091_v31  ;;  %vm2312_vm1 = vweird.f32 %v4613_v13 }
 0x23c   : > { %v4615_v61 = vadd.f32 2.0, %v1316_v42  ;;  %v4617_v46 = vpop.eup %3092  ;;  %v2298_v16 = vmul.f32 %v3091_v31, %v2297_v27  ;;  %v2431_v44 = vmul.f32 %v2399_v5, %v3762_v18  ;;  %vm2304_vm9 = vmor %vm2302_vm8, %vm2303_vm4  ;;  %v1611_v59 = vsel %vm1610_vm15, %v4554_v62, %v4596_v48 }
 0x23d   : > { %v4621_v23 = vmul.f32 %v4586_v52, %v1616_v4  ;;  %v1623_v40 = vmul.f32 %v4617_v46, %v4591_v55  ;;  %vm1620_vm8 = vmor %vm1618_vm7, %vm1619_vm3  ;;  %vm1629_vm11 = vweird.f32 %v4617_v46 }
 0x23e   : > { %3096 = vrsqrt.f32 %v4615_v61  ;;  %v2299_v14 = vmul.f32 0.5, %v2298_v16  ;;  %2463 = vst.msk [vmem:[%s3712_s13 + $0xb8] sm:$0xff] %vm1078_vm0, %v2431_v44  ;;  %vm2015_vm4 = vcmp.eq.f32.partialorder %v4615_v61, inf  ;;  %v2018_v16 = vand.u32 2147483648, %v4615_v61 }
 0x23f   : > { %v1990_v51 = vmul.f32 %v4621_v23, %v4552_v20  ;;  %v1624_v22 = vmul.f32 %v4617_v46, %v1623_v40 }
 0x240   : > { %v2300_v1 = vsub.f32 1.5, %v2299_v14 }
 0x241   : > { %v1279_v35 = vpop.f32.mrf.mxu3  ;;  %v1992_v18 = vsel %vm1991_vm5, %v4552_v20, %v1990_v51  ;;  %v1625_v33 = vmul.f32 0.5, %v1624_v22  ;;  %v3095_v9 = vpop.eup %3094  ;;  %vm2017_vm5 = vcmp.eq.f32.partialorder %v4615_v61, 0.0 }
 0x242   : > { %v1317_v41 = vmul.f32 2e-05, %v1279_v35  ;;  %v2301_v6 = vmul.f32 %v3091_v31, %v2300_v1  ;;  %v4641_v3 = vsel %vm1993_vm6, %v1994_v32, %v1992_v18  ;;  %v2307_v49 = vmul.f32 %v3095_v9, %v4613_v13 }
 0x243   : > { %3098 = vrsqrt.f32 %v4641_v3  ;;  %v1626_v54 = vsub.f32 1.5, %v1625_v33  ;;  %vm2313_vm13 = vweird.f32 %v3095_v9 }
 0x244   : > { %v4643_v8 = vpop.eup %3096  ;;  %v2305_v30 = vsel %vm2304_vm9, %v3091_v31, %v2301_v6  ;;  %v2308_v2 = vmul.f32 %v3095_v9, %v2307_v49  ;;  %v4651_v7 = vadd.f32 2.0, %v1317_v41  ;;  %vm2314_vm2 = vmor %vm2312_vm1, %vm2313_vm13  ;;  %vm2322_vm9 = vweird.f32 %v4641_v3 }
 0x245   : > { %v1633_v28 = vmul.f32 %v4643_v8, %v4615_v61  ;;  %v2400_v19 = vmul.f32 %v2305_v30, %v1601_v53  ;;  %v4654_v45 = vmul.f32 %v4617_v46, %v1626_v54  ;;  %v1621_v41 = vsel %vm1620_vm8, %v4586_v52, %v4621_v23 }
 0x246   : > { %v2309_v50 = vmul.f32 0.5, %v2308_v2  ;;  %3100 = vrsqrt.f32 %v4651_v7  ;;  %vm1628_vm13 = vweird.f32 %v4591_v55  ;;  %vm2029_vm3 = vcmp.eq.f32.partialorder %v4651_v7, 0.0 }
 0x247   : > { %v1634_v60 = vmul.f32 %v4643_v8, %v1633_v28  ;;  %v2432_v29 = vmul.f32 %v2400_v19, %v3826_v25  ;;  %v2002_v47 = vmul.f32 %v4654_v45, %v4591_v55  ;;  %v2006_v25 = vand.u32 2147483648, %v4591_v55  ;;  %vm1630_vm15 = vmor %vm1628_vm13, %vm1629_vm11 }
 0x248   : > { %v2310_v63 = vsub.f32 1.5, %v2309_v50 }
 0x249   : > { %v1635_v34 = vmul.f32 0.5, %v1634_v60  ;;  %v1282_v11 = vpop.f32.mrf.mxu3  ;;  %v3099_v43 = vpop.eup %3098  ;;  %2464 = vst.msk [vmem:[%s3712_s13 + $0xc0] sm:$0xff] %vm1078_vm0, %v2432_v29  ;;  %v2004_v26 = vsel %vm2003_vm12, %v4591_v55, %v2002_v47 }
 0x24a   : > { %v1318_v37 = vmul.f32 2e-05, %v1282_v11  ;;  %v2317_v15 = vmul.f32 %v3099_v43, %v4641_v3  ;;  %v2311_v17 = vmul.f32 %v3095_v9, %v2310_v63  ;;  %v4675_v38 = vsel %vm2005_vm14, %v2006_v25, %v2004_v26 }
 0x24b   : > { %v1636_v31 = vsub.f32 1.5, %v1635_v34  ;;  %3102 = vrsqrt.f32 %v4675_v38  ;;  %vm2323_vm6 = vweird.f32 %v3099_v43  ;;  %vm2027_vm14 = vcmp.eq.f32.partialorder %v4651_v7, inf }
 0x24c   : > { %v4677_v42 = vadd.f32 2.0, %v1318_v37  ;;  %v2318_v27 = vmul.f32 %v3099_v43, %v2317_v15  ;;  %v4683_v4 = vpop.eup %3100  ;;  %v2315_v58 = vsel %vm2314_vm2, %v3095_v9, %v2311_v17  ;;  %vm2324_vm10 = vmor %vm2322_vm9, %vm2323_vm6  ;;  %vm2332_vm1 = vweird.f32 %v4675_v38 }
 0x24d   : > { %v4681_v12 = vmul.f32 %v4643_v8, %v1636_v31  ;;  %v2401_v21 = vmul.f32 %v2315_v58, %v1611_v59  ;;  %v1643_v62 = vmul.f32 %v4683_v4, %v4651_v7  ;;  %v2030_v11 = vand.u32 2147483648, %v4651_v7 }
 0x24e   : > { %3104 = vrsqrt.f32 %v4677_v42  ;;  %v2319_v13 = vmul.f32 0.5, %v2318_v27  ;;  %v1631_v25 = vsel %vm1630_vm15, %v4617_v46, %v4654_v45  ;;  %vm2039_vm7 = vcmp.eq.f32.partialorder %v4677_v42, inf }
 0x24f   : > { %v2014_v5 = vmul.f32 %v4681_v12, %v4615_v61  ;;  %v2433_v48 = vmul.f32 %v2401_v21, %v3848_v56  ;;  %v1644_v22 = vmul.f32 %v4683_v4, %v1643_v62  ;;  %vm2041_vm8 = vcmp.eq.f32.partialorder %v4677_v42, 0.0 }
 0x250   : > { %v2320_v40 = vsub.f32 1.5, %v2319_v13  ;;  %v2042_v46 = vand.u32 2147483648, %v4677_v42 }
 0x251   : > { %v2016_v44 = vsel %vm2015_vm4, %v4615_v61, %v2014_v5  ;;  %v1285_v14 = vpop.f32.mrf.mxu3  ;;  %v3103_v32 = vpop.eup %3102  ;;  %2465 = vst.msk [vmem:[%s3712_s13 + $0xc8] sm:$0xff] %vm1078_vm0, %v2433_v48  ;;  %v1645_v18 = vmul.f32 0.5, %v1644_v22  ;;  %vm1638_vm4 = vweird.f32 %v4615_v61 }
 0x252   : > { %v4699_v51 = vsel %vm2017_vm5, %v2018_v16, %v2016_v44  ;;  %v1319_v1 = vmul.f32 2e-05, %v1285_v14  ;;  %v2321_v35 = vmul.f32 %v3099_v43, %v2320_v40  ;;  %v2327_v20 = vmul.f32 %v3103_v32, %v4675_v38 }
 0x253   : > { %3106 = vrsqrt.f32 %v4699_v51  ;;  %v1646_v53 = vsub.f32 1.5, %v1645_v18  ;;  %vm2333_vm12 = vweird.f32 %v3103_v32  ;;  %vm1639_vm5 = vweird.f32 %v4643_v8 }
 0x254   : > { %v4708_v56 = vpop.eup %3104  ;;  %v4711_v33 = vadd.f32 2.0, %v1319_v1  ;;  %v2325_v9 = vsel %vm2324_vm10, %v3099_v43, %v2321_v35  ;;  %v2328_v3 = vmul.f32 %v3103_v32, %v2327_v20  ;;  %vm2334_vm2 = vmor %vm2332_vm1, %vm2333_vm12  ;;  %vm2342_vm10 = vweird.f32 %v4699_v51 }
 0x255   : > { %v1653_v6 = vmul.f32 %v4708_v56, %v4677_v42  ;;  %v2402_v49 = vmul.f32 %v2325_v9, %v1621_v41  ;;  %v4721_v19 = vmul.f32 %v4683_v4, %v1646_v53  ;;  %vm1640_vm9 = vmor %vm1638_vm4, %vm1639_vm5  ;;  %vm1648_vm1 = vweird.f32 %v4651_v7 }
 0x256   : > { %3108 = vrsqrt.f32 %v4711_v33  ;;  %v2329_v28 = vmul.f32 0.5, %v2328_v3  ;;  %vm2051_vm12 = vcmp.eq.f32.partialorder %v4711_v33, inf  ;;  %v2054_v22 = vand.u32 2147483648, %v4711_v33 }
 0x257   : > { %v1654_v30 = vmul.f32 %v4708_v56, %v1653_v6  ;;  %v2434_v54 = vmul.f32 %v2402_v49, %v3902_v39  ;;  %v2026_v29 = vmul.f32 %v4721_v19, %v4651_v7  ;;  %vm2053_vm13 = vcmp.eq.f32.partialorder %v4711_v33, 0.0 }
 0x258   : > { %v2330_v23 = vsub.f32 1.5, %v2329_v28  ;;  %vm1659_vm5 = vweird.f32 %v4708_v56 }
 0x259   : > { %v3107_v2 = vpop.eup %3106  ;;  %v1655_v52 = vmul.f32 0.5, %v1654_v30  ;;  %2466 = vst.msk [vmem:[%s3712_s13 + $0xd0] sm:$0xff] %vm1078_vm0, %v2434_v54  ;;  %v2028_v43 = vsel %vm2027_vm14, %v4651_v7, %v2026_v29  ;;  %vm1649_vm14 = vweird.f32 %v4683_v4 }
 0x25a   : > { %v2337_v60 = vmul.f32 %v3107_v2, %v4699_v51  ;;  %v2331_v47 = vmul.f32 %v3103_v32, %v2330_v23  ;;  %v2031_v26 = vsel %vm2029_vm3, %v2030_v11, %v2028_v43  ;;  %vm2343_vm6 = vweird.f32 %v3107_v2 }
 0x25b   : > { %v1656_v39 = vsub.f32 1.5, %v1655_v52  ;;  %3110 = vrsqrt.f32 %v2031_v26  ;;  %vm2344_vm11 = vmor %vm2342_vm10, %vm2343_vm6  ;;  %vm2352_vm3 = vweird.f32 %v2031_v26 }
 0x25c   : > { %v4731_v50 = vpop.eup %3108  ;;  %v2338_v34 = vmul.f32 %v3107_v2, %v2337_v60  ;;  %v2335_v37 = vsel %vm2334_vm2, %v3103_v32, %v2331_v47  ;;  %vm1650_vm2 = vmor %vm1648_vm1, %vm1649_vm14 }
 0x25d   : > { %v4738_v55 = vmul.f32 %v4708_v56, %v1656_v39  ;;  %v1663_v63 = vmul.f32 %v4731_v50, %v4711_v33  ;;  %v2403_v31 = vmul.f32 %v2335_v37, %v1631_v25  ;;  %v1651_v9 = vsel %vm1650_vm2, %v4683_v4, %v4721_v19 }
 0x25e   : > { %v2339_v15 = vmul.f32 0.5, %v2338_v34 }
 0x25f   : > { %v2038_v38 = vmul.f32 %v4738_v55, %v4677_v42  ;;  %v1664_v27 = vmul.f32 %v4731_v50, %v1663_v63  ;;  %v2435_v59 = vmul.f32 %v2403_v31, %v3927_v36  ;;  %v1641_v36 = vsel %vm1640_vm9, %v4643_v8, %v4681_v12 }
 0x260   : > { %v2340_v17 = vsub.f32 1.5, %v2339_v15 }
 0x261   : > { %v2040_v45 = vsel %vm2039_vm7, %v4677_v42, %v2038_v38  ;;  %v1665_v58 = vmul.f32 0.5, %v1664_v27  ;;  %2467 = vst.msk [vmem:[%s3712_s13 + $0xd8] sm:$0xff] %vm1078_vm0, %v2435_v59  ;;  %v3111_v16 = vpop.eup %3110  ;;  %vm1658_vm7 = vweird.f32 %v4677_v42 }
 0x262   : > { %v2341_v61 = vmul.f32 %v3107_v2, %v2340_v17  ;;  %v2043_v21 = vsel %vm2041_vm8, %v2042_v46, %v2040_v45  ;;  %v2347_v48 = vmul.f32 %v3111_v16, %v2031_v26  ;;  %vm2353_vm15 = vweird.f32 %v3111_v16  ;;  %vm1660_vm8 = vmor %vm1658_vm7, %vm1659_vm5 }
 0x263   : > { %3112 = vrsqrt.f32 %v2043_v21  ;;  %v1666_v5 = vsub.f32 1.5, %v1665_v58  ;;  %vm2354_vm4 = vmor %vm2352_vm3, %vm2353_vm15  ;;  %vm2362_vm9 = vweird.f32 %v2043_v21  ;;  %v1661_v4 = vsel %vm1660_vm8, %v4708_v56, %v4738_v55 }
 0x264   : > { %v2345_v13 = vsel %vm2344_vm11, %v3107_v2, %v2341_v61  ;;  %v2348_v14 = vmul.f32 %v3111_v16, %v2347_v48  ;;  %vm1669_vm11 = vweird.f32 %v4731_v50 }
 0x265   : > { %v2404_v62 = vmul.f32 %v2345_v13, %v1641_v36  ;;  %v1667_v40 = vmul.f32 %v4731_v50, %v1666_v5 }
 0x266   : > { %v2349_v12 = vmul.f32 0.5, %v2348_v14 }
 0x267   : > { %v2436_v44 = vmul.f32 %v2404_v62, %v3990_v10  ;;  %v2050_v51 = vmul.f32 %v1667_v40, %v4711_v33 }
 0x268   : > { %v2350_v10 = vsub.f32 1.5, %v2349_v12 }
 0x269   : > { %2468 = vst.msk [vmem:[%s3712_s13 + $0xe0] sm:$0xff] %vm1078_vm0, %v2436_v44  ;;  %v3113_v8 = vpop.eup %3112  ;;  %v2052_v1 = vsel %vm2051_vm12, %v4711_v33, %v2050_v51 }
 0x26a   : > { %v2357_v32 = vmul.f32 %v3113_v8, %v2043_v21  ;;  %v2055_v35 = vsel %vm2053_vm13, %v2054_v22, %v2052_v1  ;;  %v2351_v18 = vmul.f32 %v3111_v16, %v2350_v10  ;;  %vm2363_vm6 = vweird.f32 %v3113_v8 }
 0x26b   : > { %3114 = vrsqrt.f32 %v2055_v35  ;;  %vm2364_vm10 = vmor %vm2362_vm9, %vm2363_vm6  ;;  %vm1668_vm13 = vweird.f32 %v4711_v33  ;;  %vm2372_vm15 = vweird.f32 %v2055_v35 }
 0x26c   : > { %v2358_v20 = vmul.f32 %v3113_v8, %v2357_v32  ;;  %v2355_v6 = vsel %vm2354_vm4, %v3111_v16, %v2351_v18  ;;  %vm1670_vm14 = vmor %vm1668_vm13, %vm1669_vm11 }
 0x26d   : > { %v2405_v49 = vmul.f32 %v2355_v6, %v1651_v9  ;;  %v1671_v56 = vsel %vm1670_vm14, %v4731_v50, %v1667_v40 }
 0x26e   : > { %v2359_v41 = vmul.f32 0.5, %v2358_v20 }
 0x26f   : > { %v2437_v7 = vmul.f32 %v2405_v49, %v4014_v0 }
 0x270   : > { %v2360_v3 = vsub.f32 1.5, %v2359_v41 }
 0x271   : > { %v3115_v53 = vpop.eup %3114  ;;  %2469 = vst.msk [vmem:[%s3712_s13 + $0xe8] sm:$0xff] %vm1078_vm0, %v2437_v7 }
 0x272   : > { %v2361_v30 = vmul.f32 %v3113_v8, %v2360_v3  ;;  %v2367_v54 = vmul.f32 %v3115_v53, %v2055_v35  ;;  %vm2373_vm12 = vweird.f32 %v3115_v53 }
 0x273   : > { %vm2374_vm1 = vmor %vm2372_vm15, %vm2373_vm12 }
 0x274   : > { %v2365_v28 = vsel %vm2364_vm10, %v3113_v8, %v2361_v30  ;;  %v2368_v19 = vmul.f32 %v3115_v53, %v2367_v54 }
 0x275   : > { %v2406_v2 = vmul.f32 %v2365_v28, %v1661_v4 }
 0x276   : > { %v2369_v52 = vmul.f32 0.5, %v2368_v19 }
 0x277   : > { %v2438_v42 = vmul.f32 %v2406_v2, %v4111_v57 }
 0x278   : > { %v2370_v0 = vsub.f32 1.5, %v2369_v52 }
 0x279   : > { %2470 = vst.msk [vmem:[%s3712_s13 + $0xf0] sm:$0xff] %vm1078_vm0, %v2438_v42 }
 0x27a   : > { %v2371_v23 = vmul.f32 %v3115_v53, %v2370_v0 }
 0x27c   : > { %v2375_v60 = vsel %vm2374_vm1, %v3115_v53, %v2371_v23 }
 0x27d   : > { %v2407_v29 = vmul.f32 %v2375_v60, %v1671_v56 }
 0x27f   : > { %v2439_v39 = vmul.f32 %v2407_v29, %v4141_v24 }
 0x281   : > { %2471 = vst.msk [vmem:[%s3712_s13 + $0xf8] sm:$0xff] %vm1078_vm0, %v2439_v39 }
 0x282 PF: > { %p14_p7 = scmp.ge.s32.totalorder %s3230_s20, 4   ;;  %s4828_s15 = smov %s3173_s16 }
 0x283   : > { %s4829_s16 = smov %s3177_s17  ;;  %s4830_s17 = smov %s3240_s23 }
 0x284   : > { %s4831_s18 = smov %s3230_s20  ;;  %16 = sbr.rel (!%p14_p7) target bundleno = 3 (0x3), region = 76 }
 0x289   :  { %2494 = vsyncpa [#allocation3], 1 }
 0x28a   :  { %2496 = vsyncpa [#allocation3 + $0x1], 1 }

</bundles_post_ra>
